<compile_context>
chip_gen: v7x
topology: tpu7x:2x2x1
jax: 0.10.0
libtpu: 0.0.40
codegen_flags: <defaults>
</compile_context>

<pallas_src>
import jax
import jax.numpy as jnp
from jax import lax
from jax.experimental import pallas as pl
from jax.experimental.pallas import tpu as pltpu


# ----------------------------------------------------------------------------
# Kernel 1: question channel — tanh + single-layer LSTM (one invocation,
#           internal time loop) + fused question_mid_fc projection.
# ----------------------------------------------------------------------------
def lstm_kernel(x_ref, wih_ref, whh_ref, b_ref, wq_ref, bq_ref,
                h_out_ref, qf_out_ref, xg_scr):
    T, B, E = x_ref.shape
    H = h_out_ref.shape[1]

    # QnsEmbedding applies tanh to the packed embeddings before the LSTM.
    x_all = jnp.tanh(x_ref[...].astype(jnp.float32))                  # [T,B,E]
    # Input-to-gate projection for ALL timesteps as one big MXU matmul.
    xg = jnp.dot(x_all.reshape(T * B, E).astype(jnp.bfloat16), wih_ref[...],
                 preferred_element_type=jnp.float32)                  # [T*B,4H]
    xg_scr[...] = xg.reshape(T, B, 4 * H) + b_ref[...]                # + (b_ih+b_hh)

    whh = whh_ref[...]                                                # bf16 [H,4H]

    def step(t, carry):
        h, c = carry                                                  # f32 [B,H]
        gates = xg_scr[t] + jnp.dot(h.astype(jnp.bfloat16), whh,
                                    preferred_element_type=jnp.float32)
        i = jax.nn.sigmoid(gates[:, 0 * H:1 * H])
        f = jax.nn.sigmoid(gates[:, 1 * H:2 * H])
        g = jnp.tanh(gates[:, 2 * H:3 * H])
        o = jax.nn.sigmoid(gates[:, 3 * H:4 * H])
        c_new = f * c + i * g
        h_new = o * jnp.tanh(c_new)
        return h_new, c_new

    h0 = jnp.zeros((B, H), jnp.float32)
    c0 = jnp.zeros((B, H), jnp.float32)
    h_last, _ = lax.fori_loop(0, T, step, (h0, c0), unroll=True)

    # Only the final hidden state is needed (hn[-1]); write it once.
    h_out_ref[...] = h_last
    # question_mid_fc fused here (whole batch in one small matmul) so the
    # attention kernel receives the already-projected [B, K] features.
    qf_out_ref[...] = (jnp.dot(h_last.astype(jnp.bfloat16), wq_ref[...],
                               preferred_element_type=jnp.float32)
                       + bq_ref[...])


def lstm_qproj(x_tbe, w_ih_bf16, w_hh_bf16, b_lstm, wq_bf16, bq):
    T, B, E = x_tbe.shape
    H = w_hh_bf16.shape[0]
    K = wq_bf16.shape[1]
    return pl.pallas_call(
        lstm_kernel,
        out_shape=(jax.ShapeDtypeStruct((B, H), jnp.float32),
                   jax.ShapeDtypeStruct((B, K), jnp.float32)),
        scratch_shapes=[pltpu.VMEM((T, B, 4 * H), jnp.float32)],
    )(x_tbe, w_ih_bf16, w_hh_bf16, b_lstm, wq_bf16, bq)


# ----------------------------------------------------------------------------
# Kernel 2: attention channel + glimpse-weighted pooling (fused, batch-tiled)
# ----------------------------------------------------------------------------
def attn_pool_kernel(img_ref, qf_ref, w1_ref, b1_ref, w2_ref, b2_ref, out_ref):
    img = img_ref[...].astype(jnp.float32)                            # [Bt,P,C]
    # F.normalize(p=2, dim=1): per spatial position, L2-normalize channels
    # (channels are the lane axis in [B,P,C] layout -> cheap lane reduce).
    # max(||v||, 1e-12) == sqrt(max(sum v^2, 1e-24)), so rsqrt on the EUP keeps
    # semantics while freeing the VALU of the divide.
    sumsq = jnp.sum(img * img, axis=-1, keepdims=True)                # [Bt,P,1]
    img_n = img * lax.rsqrt(jnp.maximum(sumsq, 1e-24))
    img_nb = img_n.astype(jnp.bfloat16)

    # conv_1 (1x1 conv == per-position matmul over channels).
    proj = (jnp.einsum("bpc,ck->bpk", img_nb, w1_ref[...],
                       preferred_element_type=jnp.float32)
            + b1_ref[...])                                            # [Bt,P,K]
    # + precomputed question projection (broadcast over positions), ReLU.
    act = jnp.maximum(proj + qf_ref[...], 0.0)                        # [Bt,P,K]

    # conv_2 (1x1) -> glimpse logits.
    logits = (jnp.einsum("bpk,kg->bpg", act.astype(jnp.bfloat16), w2_ref[...],
                         preferred_element_type=jnp.float32)
              + b2_ref[...])                                          # [Bt,P,G]

    # Softmax over ALL glimpse*P entries per sample (softmax(output.view(b,-1))).
    m = jnp.max(jnp.max(logits, axis=2, keepdims=True), axis=1, keepdims=True)
    e = jnp.exp(logits - m)
    denom = jnp.sum(jnp.sum(e, axis=2, keepdims=True), axis=1, keepdims=True)
    attn = e * pl.reciprocal(denom, approx=True)                      # [Bt,P,G]

    # Glimpse-weighted pooling: out[b,g,c] = sum_p attn[b,p,g] * img_n[b,p,c]
    out_ref[...] = jnp.einsum("bpg,bpc->bgc", attn.astype(jnp.bfloat16), img_nb,
                              preferred_element_type=jnp.float32)     # [Bt,G,C]


def attention_pool(img_bpc, qf_b1k, w1_bf16, b1, w2_bf16, b2, *, bt):
    B, P, C = img_bpc.shape
    K = w1_bf16.shape[1]
    G = w2_bf16.shape[1]
    assert B % bt == 0
    return pl.pallas_call(
        attn_pool_kernel,
        out_shape=jax.ShapeDtypeStruct((B, G, C), jnp.float32),
        grid_spec=pltpu.PrefetchScalarGridSpec(
            num_scalar_prefetch=0,
            grid=(B // bt,),
            in_specs=[
                pl.BlockSpec((bt, P, C), lambda b: (b, 0, 0)),
                pl.BlockSpec((bt, 1, K), lambda b: (b, 0, 0)),
                pl.BlockSpec((C, K), lambda b: (0, 0)),   # weights: resident
                pl.BlockSpec((1, K), lambda b: (0, 0)),
                pl.BlockSpec((K, G), lambda b: (0, 0)),
                pl.BlockSpec((1, G), lambda b: (0, 0)),
            ],
            out_specs=pl.BlockSpec((bt, G, C), lambda b: (b, 0, 0)),
        ),
        compiler_params=pltpu.CompilerParams(
            dimension_semantics=("parallel",)),
    )(img_bpc, qf_b1k, w1_bf16, b1, w2_bf16, b2)


# ----------------------------------------------------------------------------
# Kernel 3: resolve_fc head (Linear -> ReLU -> Linear -> Softmax), tiled over
#           the fc1 output / fc2 reduction dimension so weights stream.
# ----------------------------------------------------------------------------
def mlp_head_kernel(x_ref, w1_ref, b1_ref, w2_ref, b2_ref, o_ref, acc_ref):
    j = pl.program_id(0)

    @pl.when(j == 0)
    def _():
        acc_ref[...] = jnp.zeros_like(acc_ref)

    h = (jnp.dot(x_ref[...], w1_ref[...],
                 preferred_element_type=jnp.float32) + b1_ref[...])
    h = jnp.maximum(h, 0.0)
    acc_ref[...] += jnp.dot(h.astype(jnp.bfloat16), w2_ref[...],
                            preferred_element_type=jnp.float32)

    @pl.when(j == pl.num_programs(0) - 1)
    def _():
        logits = acc_ref[...] + b2_ref[...]
        m = jnp.max(logits, axis=1, keepdims=True)
        e = jnp.exp(logits - m)
        o_ref[...] = e * pl.reciprocal(jnp.sum(e, axis=1, keepdims=True),
                                       approx=True)


def mlp_head(feat_bf16, w1_bf16, b1, w2_bf16, b2, *, th):
    B, din = feat_bf16.shape
    fc_hidden = w1_bf16.shape[1]
    out_size = w2_bf16.shape[1]
    assert fc_hidden % th == 0
    return pl.pallas_call(
        mlp_head_kernel,
        out_shape=jax.ShapeDtypeStruct((B, out_size), jnp.float32),
        grid_spec=pltpu.PrefetchScalarGridSpec(
            num_scalar_prefetch=0,
            grid=(fc_hidden // th,),
            in_specs=[
                pl.BlockSpec((B, din), lambda j: (0, 0)),        # resident acts
                pl.BlockSpec((din, th), lambda j: (0, j)),       # stream fc1
                pl.BlockSpec((1, th), lambda j: (0, j)),
                pl.BlockSpec((th, out_size), lambda j: (j, 0)),  # stream fc2
                pl.BlockSpec((1, out_size), lambda j: (0, 0)),
            ],
            out_specs=pl.BlockSpec((B, out_size), lambda j: (0, 0)),
            scratch_shapes=[pltpu.VMEM((B, out_size), jnp.float32)],
        ),
        compiler_params=pltpu.CompilerParams(
            dimension_semantics=("arbitrary",)),
    )(feat_bf16, w1_bf16, b1, w2_bf16, b2)


# ----------------------------------------------------------------------------
# Full ConcatNet forward (layout/dtype glue in plain JAX, hot paths in Pallas)
# ----------------------------------------------------------------------------
def concat_net_forward(image_feat, questions, p, *,
                       attn_batch_tile=4, head_hidden_tile=128):
    B, C, S1, S2 = image_feat.shape
    P = S1 * S2
    bf16 = jnp.bfloat16

    # Image to [B, P, C]: channels on the lane axis (wrapper-side layout
    # plumbing so the kernel needs no transposes).
    img_bpc = jnp.transpose(image_feat.reshape(B, C, P), (0, 2, 1))

    # Question channel: embedding lookup (glue) + Pallas LSTM (+ fused q_fc).
    # TODO(synk): real PyTorch LSTM weights are [4H,E]/[4H,H] (gate order
    #             i,f,g,o) with two biases; transpose and sum before loading.
    emb = jnp.take(p["emb_table"], questions, axis=0)         # [B, T, E]
    x_tbe = jnp.transpose(emb, (1, 0, 2))                     # [T, B, E]
    q_embed, q_proj = lstm_qproj(
        x_tbe, p["w_ih"].astype(bf16), p["w_hh"].astype(bf16), p["b_lstm"],
        p["w_qfc"].astype(bf16), p["b_qfc"])                  # [B,H], [B,K]

    # Attention channel + glimpse pooling (fused Pallas kernel, batch-tiled).
    bt = min(attn_batch_tile, B)
    while B % bt:
        bt -= 1
    img_glimpse = attention_pool(
        img_bpc, q_proj[:, None, :],
        p["w_conv1"].astype(bf16), p["b_conv1"],
        p["w_conv2"].astype(bf16), p["b_conv2"], bt=bt)       # [B, G, C]
    image_final = img_glimpse.reshape(B, -1)                  # [B, G*C]

    # Concat + resolve_fc (Dropout treated as identity; see TODO above).
    feat = jnp.concatenate([image_final, q_embed], axis=1).astype(bf16)
    fc_hidden = p["w_fc1"].shape[1]
    th = min(head_hidden_tile, fc_hidden)
    while fc_hidden % th:
        th -= 1
    return mlp_head(feat, p["w_fc1"].astype(bf16), p["b_fc1"],
                    p["w_fc2"].astype(bf16), p["b_fc2"], th=th)


# Single compiled program: glue ops (gather/transpose/casts/concat) fuse with
# the three pallas_calls instead of running eagerly between them.
concat_net_forward_jit = jax.jit(concat_net_forward)


def init_params(key, vocab, E, H, C, K, G, fc_hidden, out_size):
    ks = jax.random.split(key, 14)
    s = 0.1
    f32 = jnp.float32
    return {
        "emb_table": (jax.random.normal(ks[0], (vocab, E)) * s).astype(f32),
        "w_ih": (jax.random.normal(ks[1], (E, 4 * H)) * s).astype(f32),
        "w_hh": (jax.random.normal(ks[2], (H, 4 * H)) * s).astype(f32),
        "b_lstm": (jax.random.normal(ks[3], (1, 4 * H)) * s).astype(f32),
        "w_conv1": (jax.random.normal(ks[4], (C, K)) * s).astype(f32),
        "b_conv1": (jax.random.normal(ks[5], (1, K)) * s).astype(f32),
        "w_qfc": (jax.random.normal(ks[6], (H, K)) * s).astype(f32),
        "b_qfc": (jax.random.normal(ks[7], (1, K)) * s).astype(f32),
        "w_conv2": (jax.random.normal(ks[8], (K, G)) * s).astype(f32),
        "b_conv2": (jax.random.normal(ks[9], (1, G)) * s).astype(f32),
        "w_fc1": (jax.random.normal(ks[10], (G * C + H, fc_hidden)) * s).astype(f32),
        "b_fc1": (jax.random.normal(ks[11], (1, fc_hidden)) * s).astype(f32),
        "w_fc2": (jax.random.normal(ks[12], (fc_hidden, out_size)) * s).astype(f32),
        "b_fc2": (jax.random.normal(ks[13], (1, out_size)) * s).astype(f32),
    }


if __name__ == "__main__":
    # Small shapes consistent with the module, chosen (8,128)-friendly so the
    # demo isn't dominated by masked partial-vreg ops (prod dims 2048/1024/512
    # are already aligned).
    B, C, S = 8, 128, 4          # batch, image feature channels, spatial
    K, G = 128, 2                # attention hidden, glimpses
    H, E, T = 128, 32, 8         # question emb size, word emb size, seq len
    VOCAB, FC_HID, OUT = 64, 128, 128

    key = jax.random.PRNGKey(0)
    k_param, k_img, k_q = jax.random.split(key, 3)
    params = init_params(k_param, VOCAB, E, H, C, K, G, FC_HID, OUT)

    # TODO(synk): ResNet152 backbone omitted — this stands in for its output.
    image_feat = jax.random.normal(k_img, (B, C, S, S), dtype=jnp.float32)
    questions = jax.random.randint(k_q, (B, T), 0, VOCAB, dtype=jnp.int32)

    out = concat_net_forward_jit(image_feat, questions, params)
    out = jax.block_until_ready(out)
    assert out.shape == (B, OUT)
    print("KERNEL_OK")
</pallas_src>

<mosaic_0001>
module attributes {stable_mosaic.version = 11 : i64} {
  func.func @attn_pool_kernel(%arg0: i32, %arg1: memref<4x16x128xf32, #tpu.memory_space<vmem>>, %arg2: memref<4x1x128xf32, #tpu.memory_space<vmem>>, %arg3: memref<128x128xbf16, #tpu.memory_space<vmem>>, %arg4: memref<1x128xf32, #tpu.memory_space<vmem>>, %arg5: memref<128x2xbf16, #tpu.memory_space<vmem>>, %arg6: memref<1x2xf32, #tpu.memory_space<vmem>>, %arg7: memref<4x2x128xf32, #tpu.memory_space<vmem>>) attributes {dimension_semantics = [#tpu.dimension_semantics<parallel>], iteration_bounds = array<i64: 2>, scalar_prefetch = 0 : i64, scratch_operands = 0 : i64, tpu.core_type = #tpu.core_type<tc>, window_params = [{transform_indices = @transform_0, window_bounds = array<i64: 4, 16, 128>}, {transform_indices = @transform_1, window_bounds = array<i64: 4, 1, 128>}, {pipeline_mode = #tpu.pipeline_mode<synchronous>, transform_indices = @transform_2, window_bounds = array<i64: 128, 128>}, {pipeline_mode = #tpu.pipeline_mode<synchronous>, transform_indices = @transform_3, window_bounds = array<i64: 1, 128>}, {pipeline_mode = #tpu.pipeline_mode<synchronous>, transform_indices = @transform_4, window_bounds = array<i64: 128, 2>}, {pipeline_mode = #tpu.pipeline_mode<synchronous>, transform_indices = @transform_5, window_bounds = array<i64: 1, 2>}, {transform_indices = @transform_6, window_bounds = array<i64: 4, 2, 128>}]} {
    %c0 = arith.constant 0 : index
    %c0_0 = arith.constant 0 : index
    %c0_1 = arith.constant 0 : index
    %0 = vector.load %arg1[%c0, %c0_0, %c0_1] : memref<4x16x128xf32, #tpu.memory_space<vmem>>, vector<4x16x128xf32>
    %1 = arith.mulf %0, %0 : vector<4x16x128xf32>
    %cst = arith.constant dense<0.000000e+00> : vector<4x16xf32>
    %2 = vector.multi_reduction <add>, %1, %cst [2] : vector<4x16x128xf32> to vector<4x16xf32>
    %3 = vector.shape_cast %2 : vector<4x16xf32> to vector<4x16x1xf32>
    %cst_2 = arith.constant 1.000000e-24 : f32
    %4 = vector.broadcast %cst_2 : f32 to vector<4x16x1xf32>
    %5 = arith.maximumf %3, %4 : vector<4x16x1xf32>
    %6 = math.rsqrt %5 : vector<4x16x1xf32>
    %7 = vector.broadcast %6 : vector<4x16x1xf32> to vector<4x16x128xf32>
    %8 = arith.mulf %0, %7 : vector<4x16x128xf32>
    %9 = arith.truncf %8 : vector<4x16x128xf32> to vector<4x16x128xbf16>
    %c0_3 = arith.constant 0 : index
    %c0_4 = arith.constant 0 : index
    %10 = vector.load %arg3[%c0_3, %c0_4] : memref<128x128xbf16, #tpu.memory_space<vmem>>, vector<128x128xbf16>
    "tpu.trace_start"() <{level = 10 : i32, message = "bpc,ck->bpk"}> : () -> ()
    %cst_5 = arith.constant dense<0.000000e+00> : vector<4x16x128xf32>
    %11 = tpu.matmul %9, %10, %cst_5 {dimension_numbers = #tpu.dot_dimension_numbers<[2], [0], [0, 1], [1], [0, 0, 0, 1, 1, 1], [], []>} : vector<4x16x128xbf16>, vector<128x128xbf16>, vector<4x16x128xf32> -> vector<4x16x128xf32>
    "tpu.trace_stop"() : () -> ()
    %c0_6 = arith.constant 0 : index
    %c0_7 = arith.constant 0 : index
    %12 = vector.load %arg4[%c0_6, %c0_7] : memref<1x128xf32, #tpu.memory_space<vmem>>, vector<1x128xf32>
    %13 = vector.shape_cast %12 : vector<1x128xf32> to vector<1x1x128xf32>
    %14 = vector.broadcast %13 : vector<1x1x128xf32> to vector<4x16x128xf32>
    %15 = arith.addf %11, %14 : vector<4x16x128xf32>
    %c0_8 = arith.constant 0 : index
    %c0_9 = arith.constant 0 : index
    %c0_10 = arith.constant 0 : index
    %16 = vector.load %arg2[%c0_8, %c0_9, %c0_10] : memref<4x1x128xf32, #tpu.memory_space<vmem>>, vector<4x1x128xf32>
    %17 = vector.broadcast %16 : vector<4x1x128xf32> to vector<4x16x128xf32>
    %18 = arith.addf %15, %17 : vector<4x16x128xf32>
    %cst_11 = arith.constant 0.000000e+00 : f32
    %19 = vector.broadcast %cst_11 : f32 to vector<4x16x128xf32>
    %20 = arith.maximumf %18, %19 : vector<4x16x128xf32>
    %21 = arith.truncf %20 : vector<4x16x128xf32> to vector<4x16x128xbf16>
    %c0_12 = arith.constant 0 : index
    %c0_13 = arith.constant 0 : index
    %22 = vector.load %arg5[%c0_12, %c0_13] : memref<128x2xbf16, #tpu.memory_space<vmem>>, vector<128x2xbf16>
    "tpu.trace_start"() <{level = 10 : i32, message = "bpk,kg->bpg"}> : () -> ()
    %cst_14 = arith.constant dense<0.000000e+00> : vector<4x16x2xf32>
    %23 = tpu.matmul %21, %22, %cst_14 {dimension_numbers = #tpu.dot_dimension_numbers<[2], [0], [0, 1], [1], [0, 0, 0, 1, 1, 1], [], []>} : vector<4x16x128xbf16>, vector<128x2xbf16>, vector<4x16x2xf32> -> vector<4x16x2xf32>
    "tpu.trace_stop"() : () -> ()
    %c0_15 = arith.constant 0 : index
    %c0_16 = arith.constant 0 : index
    %24 = vector.load %arg6[%c0_15, %c0_16] : memref<1x2xf32, #tpu.memory_space<vmem>>, vector<1x2xf32>
    %25 = vector.shape_cast %24 : vector<1x2xf32> to vector<1x1x2xf32>
    %26 = vector.broadcast %25 : vector<1x1x2xf32> to vector<4x16x2xf32>
    %27 = arith.addf %23, %26 : vector<4x16x2xf32>
    %cst_17 = arith.constant dense<0xFF800000> : vector<4x16xf32>
    %28 = vector.multi_reduction <maximumf>, %27, %cst_17 [2] : vector<4x16x2xf32> to vector<4x16xf32>
    %29 = vector.shape_cast %28 : vector<4x16xf32> to vector<4x16x1xf32>
    %cst_18 = arith.constant dense<0xFF800000> : vector<4x1xf32>
    %30 = vector.multi_reduction <maximumf>, %29, %cst_18 [1] : vector<4x16x1xf32> to vector<4x1xf32>
    %31 = vector.shape_cast %30 : vector<4x1xf32> to vector<4x1x1xf32>
    %32 = vector.broadcast %31 : vector<4x1x1xf32> to vector<4x16x2xf32>
    %33 = arith.subf %27, %32 : vector<4x16x2xf32>
    %34 = math.exp %33 : vector<4x16x2xf32>
    %cst_19 = arith.constant dense<0.000000e+00> : vector<4x16xf32>
    %35 = vector.multi_reduction <add>, %34, %cst_19 [2] : vector<4x16x2xf32> to vector<4x16xf32>
    %36 = vector.shape_cast %35 : vector<4x16xf32> to vector<4x16x1xf32>
    %cst_20 = arith.constant dense<0.000000e+00> : vector<4x1xf32>
    %37 = vector.multi_reduction <add>, %36, %cst_20 [1] : vector<4x16x1xf32> to vector<4x1xf32>
    %38 = vector.shape_cast %37 : vector<4x1xf32> to vector<4x1x1xf32>
    %39 = tpu.reciprocal %38 {approx = true} : vector<4x1x1xf32> -> vector<4x1x1xf32>
    %40 = vector.broadcast %39 : vector<4x1x1xf32> to vector<4x16x2xf32>
    %41 = arith.mulf %34, %40 : vector<4x16x2xf32>
    %42 = arith.truncf %41 : vector<4x16x2xf32> to vector<4x16x2xbf16>
    "tpu.trace_start"() <{level = 10 : i32, message = "bpg,bpc->bgc"}> : () -> ()
    %cst_21 = arith.constant dense<0.000000e+00> : vector<4x2x128xf32>
    %43 = tpu.matmul %42, %9, %cst_21 {dimension_numbers = #tpu.dot_dimension_numbers<[1], [1], [2], [2], [0, 0, 0, 2, 1, 2], [0], [0]>} : vector<4x16x2xbf16>, vector<4x16x128xbf16>, vector<4x2x128xf32> -> vector<4x2x128xf32>
    "tpu.trace_stop"() : () -> ()
    %c0_22 = arith.constant 0 : index
    %c0_23 = arith.constant 0 : index
    %c0_24 = arith.constant 0 : index
    %44 = vector.load %arg7[%c0_22, %c0_23, %c0_24] : memref<4x2x128xf32, #tpu.memory_space<vmem>>, vector<4x2x128xf32>
    tpu.vector_store %arg7[%c0_22, %c0_23, %c0_24], %43 {strides = array<i32>} : memref<4x2x128xf32, #tpu.memory_space<vmem>>, vector<4x2x128xf32>,
    return
  }
  func.func @transform_0(%arg0: i32) -> (i32, i32, i32) {
    %c0_i32 = arith.constant 0 : i32
    %c0_i32_0 = arith.constant 0 : i32
    %c0_i32_1 = arith.constant 0 : i32
    return %arg0, %c0_i32, %c0_i32_0 : i32, i32, i32
  }
  func.func @transform_1(%arg0: i32) -> (i32, i32, i32) {
    %c0_i32 = arith.constant 0 : i32
    %c0_i32_0 = arith.constant 0 : i32
    %c0_i32_1 = arith.constant 0 : i32
    return %arg0, %c0_i32, %c0_i32_0 : i32, i32, i32
  }
  func.func @transform_2(%arg0: i32) -> (i32, i32) {
    %c0_i32 = arith.constant 0 : i32
    %c0_i32_0 = arith.constant 0 : i32
    %c0_i32_1 = arith.constant 0 : i32
    return %c0_i32, %c0_i32_0 : i32, i32
  }
  func.func @transform_3(%arg0: i32) -> (i32, i32) {
    %c0_i32 = arith.constant 0 : i32
    %c0_i32_0 = arith.constant 0 : i32
    %c0_i32_1 = arith.constant 0 : i32
    return %c0_i32, %c0_i32_0 : i32, i32
  }
  func.func @transform_4(%arg0: i32) -> (i32, i32) {
    %c0_i32 = arith.constant 0 : i32
    %c0_i32_0 = arith.constant 0 : i32
    %c0_i32_1 = arith.constant 0 : i32
    return %c0_i32, %c0_i32_0 : i32, i32
  }
  func.func @transform_5(%arg0: i32) -> (i32, i32) {
    %c0_i32 = arith.constant 0 : i32
    %c0_i32_0 = arith.constant 0 : i32
    %c0_i32_1 = arith.constant 0 : i32
    return %c0_i32, %c0_i32_0 : i32, i32
  }
  func.func @transform_6(%arg0: i32) -> (i32, i32, i32) {
    %c0_i32 = arith.constant 0 : i32
    %c0_i32_0 = arith.constant 0 : i32
    %c0_i32_1 = arith.constant 0 : i32
    return %arg0, %c0_i32, %c0_i32_0 : i32, i32, i32
  }
}

module attributes {stable_mosaic.version = 11 : i64} {
  func.func @lstm_kernel(%arg0: memref<8x8x32xf32, #tpu.memory_space<vmem>>, %arg1: memref<32x512xbf16, #tpu.memory_space<vmem>>, %arg2: memref<128x512xbf16, #tpu.memory_space<vmem>>, %arg3: memref<1x512xf32, #tpu.memory_space<vmem>>, %arg4: memref<128x128xbf16, #tpu.memory_space<vmem>>, %arg5: memref<1x128xf32, #tpu.memory_space<vmem>>, %arg6: memref<8x128xf32, #tpu.memory_space<vmem>>, %arg7: memref<8x128xf32, #tpu.memory_space<vmem>>, %arg8: memref<8x8x512xf32, #tpu.memory_space<vmem>>) attributes {dimension_semantics = [], scalar_prefetch = 0 : i64, scratch_operands = 1 : i64, tpu.core_type = #tpu.core_type<tc>} {
    %c0 = arith.constant 0 : index
    %c0_0 = arith.constant 0 : index
    %c0_1 = arith.constant 0 : index
    %0 = vector.load %arg0[%c0, %c0_0, %c0_1] : memref<8x8x32xf32, #tpu.memory_space<vmem>>, vector<8x8x32xf32>
    %1 = math.tanh %0 : vector<8x8x32xf32>
    %2 = vector.shape_cast %1 : vector<8x8x32xf32> to vector<64x32xf32>
    %3 = arith.truncf %2 : vector<64x32xf32> to vector<64x32xbf16>
    %c0_2 = arith.constant 0 : index
    %c0_3 = arith.constant 0 : index
    %4 = vector.load %arg1[%c0_2, %c0_3] : memref<32x512xbf16, #tpu.memory_space<vmem>>, vector<32x512xbf16>
    %cst = arith.constant dense<0.000000e+00> : vector<64x512xf32>
    %5 = tpu.matmul %3, %4, %cst {dimension_numbers = #tpu.dot_dimension_numbers<[1], [0], [0], [1], [0, 0, 1, 1], [], []>} : vector<64x32xbf16>, vector<32x512xbf16>, vector<64x512xf32> -> vector<64x512xf32>
    %6 = vector.shape_cast %5 : vector<64x512xf32> to vector<8x8x512xf32>
    %c0_4 = arith.constant 0 : index
    %c0_5 = arith.constant 0 : index
    %7 = vector.load %arg3[%c0_4, %c0_5] : memref<1x512xf32, #tpu.memory_space<vmem>>, vector<1x512xf32>
    %8 = vector.shape_cast %7 : vector<1x512xf32> to vector<1x1x512xf32>
    %9 = vector.broadcast %8 : vector<1x1x512xf32> to vector<8x8x512xf32>
    %10 = arith.addf %6, %9 : vector<8x8x512xf32>
    %c0_6 = arith.constant 0 : index
    %c0_7 = arith.constant 0 : index
    %c0_8 = arith.constant 0 : index
    %11 = vector.load %arg8[%c0_6, %c0_7, %c0_8] : memref<8x8x512xf32, #tpu.memory_space<vmem>>, vector<8x8x512xf32>
    tpu.vector_store %arg8[%c0_6, %c0_7, %c0_8], %10 {strides = array<i32>} : memref<8x8x512xf32, #tpu.memory_space<vmem>>, vector<8x8x512xf32>,
    %c0_9 = arith.constant 0 : index
    %c0_10 = arith.constant 0 : index
    %12 = vector.load %arg2[%c0_9, %c0_10] : memref<128x512xbf16, #tpu.memory_space<vmem>>, vector<128x512xbf16>
    %cst_11 = arith.constant 0.000000e+00 : f32
    %13 = vector.broadcast %cst_11 : f32 to vector<8x128xf32>
    %cst_12 = arith.constant 0.000000e+00 : f32
    %14 = vector.broadcast %cst_12 : f32 to vector<8x128xf32>
    %c0_i32 = arith.constant 0 : i32
    %15 = arith.index_cast %c0_i32 : i32 to index
    %c0_13 = arith.constant 0 : index
    %c0_14 = arith.constant 0 : index
    %16 = vector.load %arg8[%15, %c0_13, %c0_14] : memref<8x8x512xf32, #tpu.memory_space<vmem>>, vector<1x8x512xf32>
    %17 = vector.shape_cast %16 : vector<1x8x512xf32> to vector<8x512xf32>
    %18 = arith.truncf %13 : vector<8x128xf32> to vector<8x128xbf16>
    %cst_15 = arith.constant dense<0.000000e+00> : vector<8x512xf32>
    %19 = tpu.matmul %18, %12, %cst_15 {dimension_numbers = #tpu.dot_dimension_numbers<[1], [0], [0], [1], [0, 0, 1, 1], [], []>} : vector<8x128xbf16>, vector<128x512xbf16>, vector<8x512xf32> -> vector<8x512xf32>
    %20 = arith.addf %17, %19 : vector<8x512xf32>
    %21 = vector.extract_strided_slice %20 {offsets = [0, 0], sizes = [8, 128], strides = [1, 1]} : vector<8x512xf32> to vector<8x128xf32>
    %22 = arith.negf %21 : vector<8x128xf32>
    %23 = math.exp %22 : vector<8x128xf32>
    %cst_16 = arith.constant 1.000000e+00 : f32
    %24 = vector.broadcast %cst_16 : f32 to vector<8x128xf32>
    %25 = arith.addf %24, %23 : vector<8x128xf32>
    %26 = arith.divf %24, %25 : vector<8x128xf32>
    %27 = vector.extract_strided_slice %20 {offsets = [0, 128], sizes = [8, 128], strides = [1, 1]} : vector<8x512xf32> to vector<8x128xf32>
    %28 = arith.negf %27 : vector<8x128xf32>
    %29 = math.exp %28 : vector<8x128xf32>
    %cst_17 = arith.constant 1.000000e+00 : f32
    %30 = vector.broadcast %cst_17 : f32 to vector<8x128xf32>
    %31 = arith.addf %30, %29 : vector<8x128xf32>
    %32 = arith.divf %30, %31 : vector<8x128xf32>
    %33 = vector.extract_strided_slice %20 {offsets = [0, 256], sizes = [8, 128], strides = [1, 1]} : vector<8x512xf32> to vector<8x128xf32>
    %34 = math.tanh %33 : vector<8x128xf32>
    %35 = vector.extract_strided_slice %20 {offsets = [0, 384], sizes = [8, 128], strides = [1, 1]} : vector<8x512xf32> to vector<8x128xf32>
    %36 = arith.negf %35 : vector<8x128xf32>
    %37 = math.exp %36 : vector<8x128xf32>
    %cst_18 = arith.constant 1.000000e+00 : f32
    %38 = vector.broadcast %cst_18 : f32 to vector<8x128xf32>
    %39 = arith.addf %38, %37 : vector<8x128xf32>
    %40 = arith.divf %38, %39 : vector<8x128xf32>
    %41 = arith.mulf %32, %14 : vector<8x128xf32>
    %42 = arith.mulf %26, %34 : vector<8x128xf32>
    %43 = arith.addf %41, %42 : vector<8x128xf32>
    %44 = math.tanh %43 : vector<8x128xf32>
    %45 = arith.mulf %40, %44 : vector<8x128xf32>
    %c1_i32 = arith.constant 1 : i32
    %46 = arith.index_cast %c1_i32 : i32 to index
    %c0_19 = arith.constant 0 : index
    %c0_20 = arith.constant 0 : index
    %47 = vector.load %arg8[%46, %c0_19, %c0_20] : memref<8x8x512xf32, #tpu.memory_space<vmem>>, vector<1x8x512xf32>
    %48 = vector.shape_cast %47 : vector<1x8x512xf32> to vector<8x512xf32>
    %49 = arith.truncf %45 : vector<8x128xf32> to vector<8x128xbf16>
    %cst_21 = arith.constant dense<0.000000e+00> : vector<8x512xf32>
    %50 = tpu.matmul %49, %12, %cst_21 {dimension_numbers = #tpu.dot_dimension_numbers<[1], [0], [0], [1], [0, 0, 1, 1], [], []>} : vector<8x128xbf16>, vector<128x512xbf16>, vector<8x512xf32> -> vector<8x512xf32>
    %51 = arith.addf %48, %50 : vector<8x512xf32>
    %52 = vector.extract_strided_slice %51 {offsets = [0, 0], sizes = [8, 128], strides = [1, 1]} : vector<8x512xf32> to vector<8x128xf32>
    %53 = arith.negf %52 : vector<8x128xf32>
    %54 = math.exp %53 : vector<8x128xf32>
    %cst_22 = arith.constant 1.000000e+00 : f32
    %55 = vector.broadcast %cst_22 : f32 to vector<8x128xf32>
    %56 = arith.addf %55, %54 : vector<8x128xf32>
    %57 = arith.divf %55, %56 : vector<8x128xf32>
    %58 = vector.extract_strided_slice %51 {offsets = [0, 128], sizes = [8, 128], strides = [1, 1]} : vector<8x512xf32> to vector<8x128xf32>
    %59 = arith.negf %58 : vector<8x128xf32>
    %60 = math.exp %59 : vector<8x128xf32>
    %cst_23 = arith.constant 1.000000e+00 : f32
    %61 = vector.broadcast %cst_23 : f32 to vector<8x128xf32>
    %62 = arith.addf %61, %60 : vector<8x128xf32>
    %63 = arith.divf %61, %62 : vector<8x128xf32>
    %64 = vector.extract_strided_slice %51 {offsets = [0, 256], sizes = [8, 128], strides = [1, 1]} : vector<8x512xf32> to vector<8x128xf32>
    %65 = math.tanh %64 : vector<8x128xf32>
    %66 = vector.extract_strided_slice %51 {offsets = [0, 384], sizes = [8, 128], strides = [1, 1]} : vector<8x512xf32> to vector<8x128xf32>
    %67 = arith.negf %66 : vector<8x128xf32>
    %68 = math.exp %67 : vector<8x128xf32>
    %cst_24 = arith.constant 1.000000e+00 : f32
    %69 = vector.broadcast %cst_24 : f32 to vector<8x128xf32>
    %70 = arith.addf %69, %68 : vector<8x128xf32>
    %71 = arith.divf %69, %70 : vector<8x128xf32>
    %72 = arith.mulf %63, %43 : vector<8x128xf32>
    %73 = arith.mulf %57, %65 : vector<8x128xf32>
    %74 = arith.addf %72, %73 : vector<8x128xf32>
    %75 = math.tanh %74 : vector<8x128xf32>
    %76 = arith.mulf %71, %75 : vector<8x128xf32>
    %c2_i32 = arith.constant 2 : i32
    %77 = arith.index_cast %c2_i32 : i32 to index
    %c0_25 = arith.constant 0 : index
    %c0_26 = arith.constant 0 : index
    %78 = vector.load %arg8[%77, %c0_25, %c0_26] : memref<8x8x512xf32, #tpu.memory_space<vmem>>, vector<1x8x512xf32>
    %79 = vector.shape_cast %78 : vector<1x8x512xf32> to vector<8x512xf32>
    %80 = arith.truncf %76 : vector<8x128xf32> to vector<8x128xbf16>
    %cst_27 = arith.constant dense<0.000000e+00> : vector<8x512xf32>
    %81 = tpu.matmul %80, %12, %cst_27 {dimension_numbers = #tpu.dot_dimension_numbers<[1], [0], [0], [1], [0, 0, 1, 1], [], []>} : vector<8x128xbf16>, vector<128x512xbf16>, vector<8x512xf32> -> vector<8x512xf32>
    %82 = arith.addf %79, %81 : vector<8x512xf32>
    %83 = vector.extract_strided_slice %82 {offsets = [0, 0], sizes = [8, 128], strides = [1, 1]} : vector<8x512xf32> to vector<8x128xf32>
    %84 = arith.negf %83 : vector<8x128xf32>
    %85 = math.exp %84 : vector<8x128xf32>
    %cst_28 = arith.constant 1.000000e+00 : f32
    %86 = vector.broadcast %cst_28 : f32 to vector<8x128xf32>
    %87 = arith.addf %86, %85 : vector<8x128xf32>
    %88 = arith.divf %86, %87 : vector<8x128xf32>
    %89 = vector.extract_strided_slice %82 {offsets = [0, 128], sizes = [8, 128], strides = [1, 1]} : vector<8x512xf32> to vector<8x128xf32>
    %90 = arith.negf %89 : vector<8x128xf32>
    %91 = math.exp %90 : vector<8x128xf32>
    %cst_29 = arith.constant 1.000000e+00 : f32
    %92 = vector.broadcast %cst_29 : f32 to vector<8x128xf32>
    %93 = arith.addf %92, %91 : vector<8x128xf32>
    %94 = arith.divf %92, %93 : vector<8x128xf32>
    %95 = vector.extract_strided_slice %82 {offsets = [0, 256], sizes = [8, 128], strides = [1, 1]} : vector<8x512xf32> to vector<8x128xf32>
    %96 = math.tanh %95 : vector<8x128xf32>
    %97 = vector.extract_strided_slice %82 {offsets = [0, 384], sizes = [8, 128], strides = [1, 1]} : vector<8x512xf32> to vector<8x128xf32>
    %98 = arith.negf %97 : vector<8x128xf32>
    %99 = math.exp %98 : vector<8x128xf32>
    %cst_30 = arith.constant 1.000000e+00 : f32
    %100 = vector.broadcast %cst_30 : f32 to vector<8x128xf32>
    %101 = arith.addf %100, %99 : vector<8x128xf32>
    %102 = arith.divf %100, %101 : vector<8x128xf32>
    %103 = arith.mulf %94, %74 : vector<8x128xf32>
    %104 = arith.mulf %88, %96 : vector<8x128xf32>
    %105 = arith.addf %103, %104 : vector<8x128xf32>
    %106 = math.tanh %105 : vector<8x128xf32>
    %107 = arith.mulf %102, %106 : vector<8x128xf32>
    %c3_i32 = arith.constant 3 : i32
    %108 = arith.index_cast %c3_i32 : i32 to index
    %c0_31 = arith.constant 0 : index
    %c0_32 = arith.constant 0 : index
    %109 = vector.load %arg8[%108, %c0_31, %c0_32] : memref<8x8x512xf32, #tpu.memory_space<vmem>>, vector<1x8x512xf32>
    %110 = vector.shape_cast %109 : vector<1x8x512xf32> to vector<8x512xf32>
    %111 = arith.truncf %107 : vector<8x128xf32> to vector<8x128xbf16>
    %cst_33 = arith.constant dense<0.000000e+00> : vector<8x512xf32>
    %112 = tpu.matmul %111, %12, %cst_33 {dimension_numbers = #tpu.dot_dimension_numbers<[1], [0], [0], [1], [0, 0, 1, 1], [], []>} : vector<8x128xbf16>, vector<128x512xbf16>, vector<8x512xf32> -> vector<8x512xf32>
    %113 = arith.addf %110, %112 : vector<8x512xf32>
    %114 = vector.extract_strided_slice %113 {offsets = [0, 0], sizes = [8, 128], strides = [1, 1]} : vector<8x512xf32> to vector<8x128xf32>
    %115 = arith.negf %114 : vector<8x128xf32>
    %116 = math.exp %115 : vector<8x128xf32>
    %cst_34 = arith.constant 1.000000e+00 : f32
    %117 = vector.broadcast %cst_34 : f32 to vector<8x128xf32>
    %118 = arith.addf %117, %116 : vector<8x128xf32>
    %119 = arith.divf %117, %118 : vector<8x128xf32>
    %120 = vector.extract_strided_slice %113 {offsets = [0, 128], sizes = [8, 128], strides = [1, 1]} : vector<8x512xf32> to vector<8x128xf32>
    %121 = arith.negf %120 : vector<8x128xf32>
    %122 = math.exp %121 : vector<8x128xf32>
    %cst_35 = arith.constant 1.000000e+00 : f32
    %123 = vector.broadcast %cst_35 : f32 to vector<8x128xf32>
    %124 = arith.addf %123, %122 : vector<8x128xf32>
    %125 = arith.divf %123, %124 : vector<8x128xf32>
    %126 = vector.extract_strided_slice %113 {offsets = [0, 256], sizes = [8, 128], strides = [1, 1]} : vector<8x512xf32> to vector<8x128xf32>
    %127 = math.tanh %126 : vector<8x128xf32>
    %128 = vector.extract_strided_slice %113 {offsets = [0, 384], sizes = [8, 128], strides = [1, 1]} : vector<8x512xf32> to vector<8x128xf32>
    %129 = arith.negf %128 : vector<8x128xf32>
    %130 = math.exp %129 : vector<8x128xf32>
    %cst_36 = arith.constant 1.000000e+00 : f32
    %131 = vector.broadcast %cst_36 : f32 to vector<8x128xf32>
    %132 = arith.addf %131, %130 : vector<8x128xf32>
    %133 = arith.divf %131, %132 : vector<8x128xf32>
    %134 = arith.mulf %125, %105 : vector<8x128xf32>
    %135 = arith.mulf %119, %127 : vector<8x128xf32>
    %136 = arith.addf %134, %135 : vector<8x128xf32>
    %137 = math.tanh %136 : vector<8x128xf32>
    %138 = arith.mulf %133, %137 : vector<8x128xf32>
    %c4_i32 = arith.constant 4 : i32
    %139 = arith.index_cast %c4_i32 : i32 to index
    %c0_37 = arith.constant 0 : index
    %c0_38 = arith.constant 0 : index
    %140 = vector.load %arg8[%139, %c0_37, %c0_38] : memref<8x8x512xf32, #tpu.memory_space<vmem>>, vector<1x8x512xf32>
    %141 = vector.shape_cast %140 : vector<1x8x512xf32> to vector<8x512xf32>
    %142 = arith.truncf %138 : vector<8x128xf32> to vector<8x128xbf16>
    %cst_39 = arith.constant dense<0.000000e+00> : vector<8x512xf32>
    %143 = tpu.matmul %142, %12, %cst_39 {dimension_numbers = #tpu.dot_dimension_numbers<[1], [0], [0], [1], [0, 0, 1, 1], [], []>} : vector<8x128xbf16>, vector<128x512xbf16>, vector<8x512xf32> -> vector<8x512xf32>
    %144 = arith.addf %141, %143 : vector<8x512xf32>
    %145 = vector.extract_strided_slice %144 {offsets = [0, 0], sizes = [8, 128], strides = [1, 1]} : vector<8x512xf32> to vector<8x128xf32>
    %146 = arith.negf %145 : vector<8x128xf32>
    %147 = math.exp %146 : vector<8x128xf32>
    %cst_40 = arith.constant 1.000000e+00 : f32
    %148 = vector.broadcast %cst_40 : f32 to vector<8x128xf32>
    %149 = arith.addf %148, %147 : vector<8x128xf32>
    %150 = arith.divf %148, %149 : vector<8x128xf32>
    %151 = vector.extract_strided_slice %144 {offsets = [0, 128], sizes = [8, 128], strides = [1, 1]} : vector<8x512xf32> to vector<8x128xf32>
    %152 = arith.negf %151 : vector<8x128xf32>
    %153 = math.exp %152 : vector<8x128xf32>
    %cst_41 = arith.constant 1.000000e+00 : f32
    %154 = vector.broadcast %cst_41 : f32 to vector<8x128xf32>
    %155 = arith.addf %154, %153 : vector<8x128xf32>
    %156 = arith.divf %154, %155 : vector<8x128xf32>
    %157 = vector.extract_strided_slice %144 {offsets = [0, 256], sizes = [8, 128], strides = [1, 1]} : vector<8x512xf32> to vector<8x128xf32>
    %158 = math.tanh %157 : vector<8x128xf32>
    %159 = vector.extract_strided_slice %144 {offsets = [0, 384], sizes = [8, 128], strides = [1, 1]} : vector<8x512xf32> to vector<8x128xf32>
    %160 = arith.negf %159 : vector<8x128xf32>
    %161 = math.exp %160 : vector<8x128xf32>
    %cst_42 = arith.constant 1.000000e+00 : f32
    %162 = vector.broadcast %cst_42 : f32 to vector<8x128xf32>
    %163 = arith.addf %162, %161 : vector<8x128xf32>
    %164 = arith.divf %162, %163 : vector<8x128xf32>
    %165 = arith.mulf %156, %136 : vector<8x128xf32>
    %166 = arith.mulf %150, %158 : vector<8x128xf32>
    %167 = arith.addf %165, %166 : vector<8x128xf32>
    %168 = math.tanh %167 : vector<8x128xf32>
    %169 = arith.mulf %164, %168 : vector<8x128xf32>
    %c5_i32 = arith.constant 5 : i32
    %170 = arith.index_cast %c5_i32 : i32 to index
    %c0_43 = arith.constant 0 : index
    %c0_44 = arith.constant 0 : index
    %171 = vector.load %arg8[%170, %c0_43, %c0_44] : memref<8x8x512xf32, #tpu.memory_space<vmem>>, vector<1x8x512xf32>
    %172 = vector.shape_cast %171 : vector<1x8x512xf32> to vector<8x512xf32>
    %173 = arith.truncf %169 : vector<8x128xf32> to vector<8x128xbf16>
    %cst_45 = arith.constant dense<0.000000e+00> : vector<8x512xf32>
    %174 = tpu.matmul %173, %12, %cst_45 {dimension_numbers = #tpu.dot_dimension_numbers<[1], [0], [0], [1], [0, 0, 1, 1], [], []>} : vector<8x128xbf16>, vector<128x512xbf16>, vector<8x512xf32> -> vector<8x512xf32>
    %175 = arith.addf %172, %174 : vector<8x512xf32>
    %176 = vector.extract_strided_slice %175 {offsets = [0, 0], sizes = [8, 128], strides = [1, 1]} : vector<8x512xf32> to vector<8x128xf32>
    %177 = arith.negf %176 : vector<8x128xf32>
    %178 = math.exp %177 : vector<8x128xf32>
    %cst_46 = arith.constant 1.000000e+00 : f32
    %179 = vector.broadcast %cst_46 : f32 to vector<8x128xf32>
    %180 = arith.addf %179, %178 : vector<8x128xf32>
    %181 = arith.divf %179, %180 : vector<8x128xf32>
    %182 = vector.extract_strided_slice %175 {offsets = [0, 128], sizes = [8, 128], strides = [1, 1]} : vector<8x512xf32> to vector<8x128xf32>
    %183 = arith.negf %182 : vector<8x128xf32>
    %184 = math.exp %183 : vector<8x128xf32>
    %cst_47 = arith.constant 1.000000e+00 : f32
    %185 = vector.broadcast %cst_47 : f32 to vector<8x128xf32>
    %186 = arith.addf %185, %184 : vector<8x128xf32>
    %187 = arith.divf %185, %186 : vector<8x128xf32>
    %188 = vector.extract_strided_slice %175 {offsets = [0, 256], sizes = [8, 128], strides = [1, 1]} : vector<8x512xf32> to vector<8x128xf32>
    %189 = math.tanh %188 : vector<8x128xf32>
    %190 = vector.extract_strided_slice %175 {offsets = [0, 384], sizes = [8, 128], strides = [1, 1]} : vector<8x512xf32> to vector<8x128xf32>
    %191 = arith.negf %190 : vector<8x128xf32>
    %192 = math.exp %191 : vector<8x128xf32>
    %cst_48 = arith.constant 1.000000e+00 : f32
    %193 = vector.broadcast %cst_48 : f32 to vector<8x128xf32>
    %194 = arith.addf %193, %192 : vector<8x128xf32>
    %195 = arith.divf %193, %194 : vector<8x128xf32>
    %196 = arith.mulf %187, %167 : vector<8x128xf32>
    %197 = arith.mulf %181, %189 : vector<8x128xf32>
    %198 = arith.addf %196, %197 : vector<8x128xf32>
    %199 = math.tanh %198 : vector<8x128xf32>
    %200 = arith.mulf %195, %199 : vector<8x128xf32>
    %c6_i32 = arith.constant 6 : i32
    %201 = arith.index_cast %c6_i32 : i32 to index
    %c0_49 = arith.constant 0 : index
    %c0_50 = arith.constant 0 : index
    %202 = vector.load %arg8[%201, %c0_49, %c0_50] : memref<8x8x512xf32, #tpu.memory_space<vmem>>, vector<1x8x512xf32>
    %203 = vector.shape_cast %202 : vector<1x8x512xf32> to vector<8x512xf32>
    %204 = arith.truncf %200 : vector<8x128xf32> to vector<8x128xbf16>
    %cst_51 = arith.constant dense<0.000000e+00> : vector<8x512xf32>
    %205 = tpu.matmul %204, %12, %cst_51 {dimension_numbers = #tpu.dot_dimension_numbers<[1], [0], [0], [1], [0, 0, 1, 1], [], []>} : vector<8x128xbf16>, vector<128x512xbf16>, vector<8x512xf32> -> vector<8x512xf32>
    %206 = arith.addf %203, %205 : vector<8x512xf32>
    %207 = vector.extract_strided_slice %206 {offsets = [0, 0], sizes = [8, 128], strides = [1, 1]} : vector<8x512xf32> to vector<8x128xf32>
    %208 = arith.negf %207 : vector<8x128xf32>
    %209 = math.exp %208 : vector<8x128xf32>
    %cst_52 = arith.constant 1.000000e+00 : f32
    %210 = vector.broadcast %cst_52 : f32 to vector<8x128xf32>
    %211 = arith.addf %210, %209 : vector<8x128xf32>
    %212 = arith.divf %210, %211 : vector<8x128xf32>
    %213 = vector.extract_strided_slice %206 {offsets = [0, 128], sizes = [8, 128], strides = [1, 1]} : vector<8x512xf32> to vector<8x128xf32>
    %214 = arith.negf %213 : vector<8x128xf32>
    %215 = math.exp %214 : vector<8x128xf32>
    %cst_53 = arith.constant 1.000000e+00 : f32
    %216 = vector.broadcast %cst_53 : f32 to vector<8x128xf32>
    %217 = arith.addf %216, %215 : vector<8x128xf32>
    %218 = arith.divf %216, %217 : vector<8x128xf32>
    %219 = vector.extract_strided_slice %206 {offsets = [0, 256], sizes = [8, 128], strides = [1, 1]} : vector<8x512xf32> to vector<8x128xf32>
    %220 = math.tanh %219 : vector<8x128xf32>
    %221 = vector.extract_strided_slice %206 {offsets = [0, 384], sizes = [8, 128], strides = [1, 1]} : vector<8x512xf32> to vector<8x128xf32>
    %222 = arith.negf %221 : vector<8x128xf32>
    %223 = math.exp %222 : vector<8x128xf32>
    %cst_54 = arith.constant 1.000000e+00 : f32
    %224 = vector.broadcast %cst_54 : f32 to vector<8x128xf32>
    %225 = arith.addf %224, %223 : vector<8x128xf32>
    %226 = arith.divf %224, %225 : vector<8x128xf32>
    %227 = arith.mulf %218, %198 : vector<8x128xf32>
    %228 = arith.mulf %212, %220 : vector<8x128xf32>
    %229 = arith.addf %227, %228 : vector<8x128xf32>
    %230 = math.tanh %229 : vector<8x128xf32>
    %231 = arith.mulf %226, %230 : vector<8x128xf32>
    %c7_i32 = arith.constant 7 : i32
    %232 = arith.index_cast %c7_i32 : i32 to index
    %c0_55 = arith.constant 0 : index
    %c0_56 = arith.constant 0 : index
    %233 = vector.load %arg8[%232, %c0_55, %c0_56] : memref<8x8x512xf32, #tpu.memory_space<vmem>>, vector<1x8x512xf32>
    %234 = vector.shape_cast %233 : vector<1x8x512xf32> to vector<8x512xf32>
    %235 = arith.truncf %231 : vector<8x128xf32> to vector<8x128xbf16>
    %cst_57 = arith.constant dense<0.000000e+00> : vector<8x512xf32>
    %236 = tpu.matmul %235, %12, %cst_57 {dimension_numbers = #tpu.dot_dimension_numbers<[1], [0], [0], [1], [0, 0, 1, 1], [], []>} : vector<8x128xbf16>, vector<128x512xbf16>, vector<8x512xf32> -> vector<8x512xf32>
    %237 = arith.addf %234, %236 : vector<8x512xf32>
    %238 = vector.extract_strided_slice %237 {offsets = [0, 0], sizes = [8, 128], strides = [1, 1]} : vector<8x512xf32> to vector<8x128xf32>
    %239 = arith.negf %238 : vector<8x128xf32>
    %240 = math.exp %239 : vector<8x128xf32>
    %cst_58 = arith.constant 1.000000e+00 : f32
    %241 = vector.broadcast %cst_58 : f32 to vector<8x128xf32>
    %242 = arith.addf %241, %240 : vector<8x128xf32>
    %243 = arith.divf %241, %242 : vector<8x128xf32>
    %244 = vector.extract_strided_slice %237 {offsets = [0, 128], sizes = [8, 128], strides = [1, 1]} : vector<8x512xf32> to vector<8x128xf32>
    %245 = arith.negf %244 : vector<8x128xf32>
    %246 = math.exp %245 : vector<8x128xf32>
    %cst_59 = arith.constant 1.000000e+00 : f32
    %247 = vector.broadcast %cst_59 : f32 to vector<8x128xf32>
    %248 = arith.addf %247, %246 : vector<8x128xf32>
    %249 = arith.divf %247, %248 : vector<8x128xf32>
    %250 = vector.extract_strided_slice %237 {offsets = [0, 256], sizes = [8, 128], strides = [1, 1]} : vector<8x512xf32> to vector<8x128xf32>
    %251 = math.tanh %250 : vector<8x128xf32>
    %252 = vector.extract_strided_slice %237 {offsets = [0, 384], sizes = [8, 128], strides = [1, 1]} : vector<8x512xf32> to vector<8x128xf32>
    %253 = arith.negf %252 : vector<8x128xf32>
    %254 = math.exp %253 : vector<8x128xf32>
    %cst_60 = arith.constant 1.000000e+00 : f32
    %255 = vector.broadcast %cst_60 : f32 to vector<8x128xf32>
    %256 = arith.addf %255, %254 : vector<8x128xf32>
    %257 = arith.divf %255, %256 : vector<8x128xf32>
    %258 = arith.mulf %249, %229 : vector<8x128xf32>
    %259 = arith.mulf %243, %251 : vector<8x128xf32>
    %260 = arith.addf %258, %259 : vector<8x128xf32>
    %261 = math.tanh %260 : vector<8x128xf32>
    %262 = arith.mulf %257, %261 : vector<8x128xf32>
    %c8_i32 = arith.constant 8 : i32
    %c0_61 = arith.constant 0 : index
    %c0_62 = arith.constant 0 : index
    %263 = vector.load %arg6[%c0_61, %c0_62] : memref<8x128xf32, #tpu.memory_space<vmem>>, vector<8x128xf32>
    tpu.vector_store %arg6[%c0_61, %c0_62], %262 {strides = array<i32>} : memref<8x128xf32, #tpu.memory_space<vmem>>, vector<8x128xf32>,
    %264 = arith.truncf %262 : vector<8x128xf32> to vector<8x128xbf16>
    %c0_63 = arith.constant 0 : index
    %c0_64 = arith.constant 0 : index
    %265 = vector.load %arg4[%c0_63, %c0_64] : memref<128x128xbf16, #tpu.memory_space<vmem>>, vector<128x128xbf16>
    %cst_65 = arith.constant dense<0.000000e+00> : vector<8x128xf32>
    %266 = tpu.matmul %264, %265, %cst_65 {dimension_numbers = #tpu.dot_dimension_numbers<[1], [0], [0], [1], [0, 0, 1, 1], [], []>} : vector<8x128xbf16>, vector<128x128xbf16>, vector<8x128xf32> -> vector<8x128xf32>
    %c0_66 = arith.constant 0 : index
    %c0_67 = arith.constant 0 : index
    %267 = vector.load %arg5[%c0_66, %c0_67] : memref<1x128xf32, #tpu.memory_space<vmem>>, vector<1x128xf32>
    %268 = vector.broadcast %267 : vector<1x128xf32> to vector<8x128xf32>
    %269 = arith.addf %266, %268 : vector<8x128xf32>
    %c0_68 = arith.constant 0 : index
    %c0_69 = arith.constant 0 : index
    %270 = vector.load %arg7[%c0_68, %c0_69] : memref<8x128xf32, #tpu.memory_space<vmem>>, vector<8x128xf32>
    tpu.vector_store %arg7[%c0_68, %c0_69], %269 {strides = array<i32>} : memref<8x128xf32, #tpu.memory_space<vmem>>, vector<8x128xf32>,
    return
  }
}

module attributes {stable_mosaic.version = 11 : i64} {
  func.func @mlp_head_kernel(%arg0: i32, %arg1: memref<8x384xbf16, #tpu.memory_space<vmem>>, %arg2: memref<384x128xbf16, #tpu.memory_space<vmem>>, %arg3: memref<1x128xf32, #tpu.memory_space<vmem>>, %arg4: memref<128x128xbf16, #tpu.memory_space<vmem>>, %arg5: memref<1x128xf32, #tpu.memory_space<vmem>>, %arg6: memref<8x128xf32, #tpu.memory_space<vmem>>, %arg7: memref<8x128xf32, #tpu.memory_space<vmem>>) attributes {dimension_semantics = [#tpu.dimension_semantics<arbitrary>], iteration_bounds = array<i64: 1>, scalar_prefetch = 0 : i64, scratch_operands = 1 : i64, tpu.core_type = #tpu.core_type<tc>, window_params = [{pipeline_mode = #tpu.pipeline_mode<synchronous>, transform_indices = @transform_0, window_bounds = array<i64: 8, 384>}, {transform_indices = @transform_1, window_bounds = array<i64: 384, 128>}, {transform_indices = @transform_2, window_bounds = array<i64: 1, 128>}, {transform_indices = @transform_3, window_bounds = array<i64: 128, 128>}, {pipeline_mode = #tpu.pipeline_mode<synchronous>, transform_indices = @transform_4, window_bounds = array<i64: 1, 128>}, {pipeline_mode = #tpu.pipeline_mode<synchronous>, transform_indices = @transform_5, window_bounds = array<i64: 8, 128>}]} {
    %c0_i32 = arith.constant 0 : i32
    %0 = arith.cmpi eq, %arg0, %c0_i32 : i32
    %1 = arith.extui %0 : i1 to i32
    %c0_i32_0 = arith.constant 0 : i32
    %2 = arith.cmpi ne, %1, %c0_i32_0 : i32
    scf.if %2 {
      %cst_16 = arith.constant 0.000000e+00 : f32
      %20 = vector.broadcast %cst_16 : f32 to vector<8x128xf32>
      %c0_17 = arith.constant 0 : index
      %c0_18 = arith.constant 0 : index
      %21 = vector.load %arg7[%c0_17, %c0_18] : memref<8x128xf32, #tpu.memory_space<vmem>>, vector<8x128xf32>
      tpu.vector_store %arg7[%c0_17, %c0_18], %20 {strides = array<i32>} : memref<8x128xf32, #tpu.memory_space<vmem>>, vector<8x128xf32>,
    } else {
    }
    %c0 = arith.constant 0 : index
    %c0_1 = arith.constant 0 : index
    %3 = vector.load %arg1[%c0, %c0_1] : memref<8x384xbf16, #tpu.memory_space<vmem>>, vector<8x384xbf16>
    %c0_2 = arith.constant 0 : index
    %c0_3 = arith.constant 0 : index
    %4 = vector.load %arg2[%c0_2, %c0_3] : memref<384x128xbf16, #tpu.memory_space<vmem>>, vector<384x128xbf16>
    %cst = arith.constant dense<0.000000e+00> : vector<8x128xf32>
    %5 = tpu.matmul %3, %4, %cst {dimension_numbers = #tpu.dot_dimension_numbers<[1], [0], [0], [1], [0, 0, 1, 1], [], []>} : vector<8x384xbf16>, vector<384x128xbf16>, vector<8x128xf32> -> vector<8x128xf32>
    %c0_4 = arith.constant 0 : index
    %c0_5 = arith.constant 0 : index
    %6 = vector.load %arg3[%c0_4, %c0_5] : memref<1x128xf32, #tpu.memory_space<vmem>>, vector<1x128xf32>
    %7 = vector.broadcast %6 : vector<1x128xf32> to vector<8x128xf32>
    %8 = arith.addf %5, %7 : vector<8x128xf32>
    %cst_6 = arith.constant 0.000000e+00 : f32
    %9 = vector.broadcast %cst_6 : f32 to vector<8x128xf32>
    %10 = arith.maximumf %8, %9 : vector<8x128xf32>
    %c0_7 = arith.constant 0 : index
    %c0_8 = arith.constant 0 : index
    %11 = vector.load %arg7[%c0_7, %c0_8] : memref<8x128xf32, #tpu.memory_space<vmem>>, vector<8x128xf32>
    %12 = arith.truncf %10 : vector<8x128xf32> to vector<8x128xbf16>
    %c0_9 = arith.constant 0 : index
    %c0_10 = arith.constant 0 : index
    %13 = vector.load %arg4[%c0_9, %c0_10] : memref<128x128xbf16, #tpu.memory_space<vmem>>, vector<128x128xbf16>
    %cst_11 = arith.constant dense<0.000000e+00> : vector<8x128xf32>
    %14 = tpu.matmul %12, %13, %cst_11 {dimension_numbers = #tpu.dot_dimension_numbers<[1], [0], [0], [1], [0, 0, 1, 1], [], []>} : vector<8x128xbf16>, vector<128x128xbf16>, vector<8x128xf32> -> vector<8x128xf32>
    %15 = arith.addf %11, %14 : vector<8x128xf32>
    %c0_12 = arith.constant 0 : index
    %c0_13 = arith.constant 0 : index
    %16 = vector.load %arg7[%c0_12, %c0_13] : memref<8x128xf32, #tpu.memory_space<vmem>>, vector<8x128xf32>
    tpu.vector_store %arg7[%c0_12, %c0_13], %15 {strides = array<i32>} : memref<8x128xf32, #tpu.memory_space<vmem>>, vector<8x128xf32>,
    %c0_i32_14 = arith.constant 0 : i32
    %17 = arith.cmpi eq, %arg0, %c0_i32_14 : i32
    %18 = arith.extui %17 : i1 to i32
    %c0_i32_15 = arith.constant 0 : i32
    %19 = arith.cmpi ne, %18, %c0_i32_15 : i32
    scf.if %19 {
      %c0_16 = arith.constant 0 : index
      %c0_17 = arith.constant 0 : index
      %20 = vector.load %arg7[%c0_16, %c0_17] : memref<8x128xf32, #tpu.memory_space<vmem>>, vector<8x128xf32>
      %c0_18 = arith.constant 0 : index
      %c0_19 = arith.constant 0 : index
      %21 = vector.load %arg5[%c0_18, %c0_19] : memref<1x128xf32, #tpu.memory_space<vmem>>, vector<1x128xf32>
      %22 = vector.broadcast %21 : vector<1x128xf32> to vector<8x128xf32>
      %23 = arith.addf %20, %22 : vector<8x128xf32>
      %cst_20 = arith.constant dense<0xFF800000> : vector<8xf32>
      %24 = vector.multi_reduction <maximumf>, %23, %cst_20 [1] : vector<8x128xf32> to vector<8xf32>
      %25 = vector.shape_cast %24 : vector<8xf32> to vector<8x1xf32>
      %26 = vector.broadcast %25 : vector<8x1xf32> to vector<8x128xf32>
      %27 = arith.subf %23, %26 : vector<8x128xf32>
      %28 = math.exp %27 : vector<8x128xf32>
      %cst_21 = arith.constant dense<0.000000e+00> : vector<8xf32>
      %29 = vector.multi_reduction <add>, %28, %cst_21 [1] : vector<8x128xf32> to vector<8xf32>
      %30 = vector.shape_cast %29 : vector<8xf32> to vector<8x1xf32>
      %31 = tpu.reciprocal %30 {approx = true} : vector<8x1xf32> -> vector<8x1xf32>
      %32 = vector.broadcast %31 : vector<8x1xf32> to vector<8x128xf32>
      %33 = arith.mulf %28, %32 : vector<8x128xf32>
      %c0_22 = arith.constant 0 : index
      %c0_23 = arith.constant 0 : index
      %34 = vector.load %arg6[%c0_22, %c0_23] : memref<8x128xf32, #tpu.memory_space<vmem>>, vector<8x128xf32>
      tpu.vector_store %arg6[%c0_22, %c0_23], %33 {strides = array<i32>} : memref<8x128xf32, #tpu.memory_space<vmem>>, vector<8x128xf32>,
    } else {
    }
    return
  }
  func.func @transform_0(%arg0: i32) -> (i32, i32) {
    %c0_i32 = arith.constant 0 : i32
    %c0_i32_0 = arith.constant 0 : i32
    %c0_i32_1 = arith.constant 0 : i32
    return %c0_i32, %c0_i32_0 : i32, i32
  }
  func.func @transform_1(%arg0: i32) -> (i32, i32) {
    %c0_i32 = arith.constant 0 : i32
    %c0_i32_0 = arith.constant 0 : i32
    return %c0_i32, %arg0 : i32, i32
  }
  func.func @transform_2(%arg0: i32) -> (i32, i32) {
    %c0_i32 = arith.constant 0 : i32
    %c0_i32_0 = arith.constant 0 : i32
    return %c0_i32, %arg0 : i32, i32
  }
  func.func @transform_3(%arg0: i32) -> (i32, i32) {
    %c0_i32 = arith.constant 0 : i32
    %c0_i32_0 = arith.constant 0 : i32
    return %arg0, %c0_i32 : i32, i32
  }
  func.func @transform_4(%arg0: i32) -> (i32, i32) {
    %c0_i32 = arith.constant 0 : i32
    %c0_i32_0 = arith.constant 0 : i32
    %c0_i32_1 = arith.constant 0 : i32
    return %c0_i32, %c0_i32_0 : i32, i32
  }
  func.func @transform_5(%arg0: i32) -> (i32, i32) {
    %c0_i32 = arith.constant 0 : i32
    %c0_i32_0 = arith.constant 0 : i32
    %c0_i32_1 = arith.constant 0 : i32
    return %c0_i32, %c0_i32_0 : i32, i32
  }
}

</mosaic_0001>

<bundles_post_ra>
// kernel: concat_net_forward.5
= control target key start
LH: loop header
LB: loop body
LE: loop exit
PB: predicated region body
PF: predicated region fallthrough
CT: control target
= control target key end

     0   :  { %v647_v2 = vmov 0.0   ;;  %vm648_vm0 = vmmov 0   ;;  %s820_s0 = inlined_call_operand.vmem [shape: bf16[8,384], index: 0, kind: input, shape index: {}]   ;;  %s821_s1 = inlined_call_operand.vmem [shape: bf16[384,128], index: 1, kind: input, shape index: {}]   ;;  %s822_s2 = inlined_call_operand.vmem [shape: f32[1,128], index: 2, kind: input, shape index: {}]   ;;  %s823_s3 = inlined_call_operand.vmem [shape: bf16[128,128], index: 3, kind: input, shape index: {}]   ;;  %s824_s4 = inlined_call_operand.vmem [shape: f32[1,128], index: 4, kind: input, shape index: {}]   ;;  %s825_s5 = inlined_call_operand.hbm [shape: f32[8,128], index: 5, kind: output, shape index: {}]  }
   0x1   :  { %v584_v0 = vld [vmem:[%s821_s1 + $0x40] sm:$0xff]   ;;  %541 = vmatprep.subr.bf16.mxu1 %v647_v2  ;;  %557 = vmatprep.mubr.msk.bf16.mxu1 %vm648_vm0, %v647_v2  ;;  %v587_v4 = vld [vmem:[%s821_s1 + $0x48] sm:$0xff]   ;;  %v590_v7 = vld [vmem:[%s821_s1 + $0x50] sm:$0xff]  }
   0x2   :  { %v585_v1 = vld [vmem:[%s821_s1] sm:$0xff]   ;;  %501 = vmatprep.subr.bf16.mxu0 %v584_v0  ;;  %v588_v5 = vld [vmem:[%s821_s1 + $0x8] sm:$0xff]   ;;  %v591_v8 = vld [vmem:[%s821_s1 + $0x10] sm:$0xff]  }
   0x3   :  { %v586_v3 = vld [vmem:[%s821_s1 + $0x80] sm:$0xff]   ;;  %502 = vmatpush3.bf16.msra.mxu0 %v585_v1  ;;  %v589_v6 = vld [vmem:[%s821_s1 + $0x88] sm:$0xff]   ;;  %v592_v9 = vld [vmem:[%s821_s1 + $0x90] sm:$0xff]  }
   0x4   :  { %542 = vmatpush3.bf16.msra.mxu1 %v586_v3  ;;  %503 = vmatprep.subr.bf16.mxu0 %v587_v4  ;;  %v593_v10 = vld [vmem:[%s821_s1 + $0x58] sm:$0xff]   ;;  %v596_v13 = vld [vmem:[%s821_s1 + $0x60] sm:$0xff]   ;;  %v599_v16 = vld [vmem:[%s821_s1 + $0x68] sm:$0xff]  }
   0x5   :  { %543 = vmatprep.subr.bf16.mxu1 %v647_v2  ;;  %v594_v11 = vld [vmem:[%s821_s1 + $0x18] sm:$0xff]   ;;  %v597_v14 = vld [vmem:[%s821_s1 + $0x20] sm:$0xff]   ;;  %v600_v17 = vld [vmem:[%s821_s1 + $0x28] sm:$0xff]  }
   0x6   :  { %v595_v12 = vld [vmem:[%s821_s1 + $0x98] sm:$0xff]   ;;  %v598_v15 = vld [vmem:[%s821_s1 + $0xa0] sm:$0xff]   ;;  %v601_v18 = vld [vmem:[%s821_s1 + $0xa8] sm:$0xff]  }
   0x7   :  { %504 = vmatpush3.bf16.msra.mxu0 %v588_v5  ;;  %v602_v19 = vld [vmem:[%s821_s1 + $0x70] sm:$0xff]   ;;  %v27_v21 = vld [vmem:[%s820_s0] sm:$0xff]  ;;  %v605_v23 = vld [vmem:[%s821_s1 + $0x78] sm:$0xff]  }
   0x8   :  { %544 = vmatpush3.bf16.msra.mxu1 %v589_v6  ;;  %505 = vmatprep.subr.bf16.mxu0 %v590_v7  ;;  %v603_v20 = vld [vmem:[%s821_s1 + $0x30] sm:$0xff]   ;;  %v466_v24 = vcombine.high %v27_v21, %v27_v21  ;;  %v606_v25 = vld [vmem:[%s821_s1 + $0x38] sm:$0xff]   ;;  %v610_v27 = vld [vmem:[%s820_s0 + $0x8] ss:$0 sps:$4 sm:$0xff]   ;;  %v465_v29 = vcombine.low %v27_v21, %v27_v21 }
   0x9   :  { %545 = vmatprep.subr.bf16.mxu1 %v647_v2  ;;  %v604_v22 = vld [vmem:[%s821_s1 + $0xb0] sm:$0xff]   ;;  %v609_v26 = vld [vmem:[%s821_s1 + $0xb8] sm:$0xff]   ;;  %v611_v28 = vld [vmem:[%s823_s3] sm:$0xff]  }
   0xa   :  { %271 = vmatprep.mubr.bf16.mxu0 %v466_v24 }
   0xb   :  { %506 = vmatpush3.bf16.msra.mxu0 %v591_v8 }
   0xc   :  { %546 = vmatpush3.bf16.msra.mxu1 %v592_v9  ;;  %507 = vmatprep.subr.bf16.mxu0 %v593_v10 }
   0xd   :  { %547 = vmatprep.subr.bf16.mxu1 %v647_v2 }
   0xf   :  { %508 = vmatpush3.bf16.msra.mxu0 %v594_v11 }
  0x10   :  { %548 = vmatpush3.bf16.msra.mxu1 %v595_v12  ;;  %509 = vmatprep.subr.bf16.mxu0 %v596_v13 }
  0x11   :  { %549 = vmatprep.subr.bf16.mxu1 %v647_v2 }
  0x13   :  { %510 = vmatpush3.bf16.msra.mxu0 %v597_v14 }
  0x14   :  { %550 = vmatpush3.bf16.msra.mxu1 %v598_v15  ;;  %511 = vmatprep.subr.bf16.mxu0 %v599_v16 }
  0x15   :  { %551 = vmatprep.subr.bf16.mxu1 %v647_v2 }
  0x17   :  { %512 = vmatpush3.bf16.msra.mxu0 %v600_v17 }
  0x18   :  { %552 = vmatpush3.bf16.msra.mxu1 %v601_v18  ;;  %513 = vmatprep.subr.bf16.mxu0 %v602_v19 }
  0x19   :  { %553 = vmatprep.subr.bf16.mxu1 %v647_v2 }
  0x1b   :  { %514 = vmatpush3.bf16.msra.mxu0 %v603_v20 }
  0x1c   :  { %554 = vmatpush3.bf16.msra.mxu1 %v604_v22  ;;  %515 = vmatprep.subr.bf16.mxu0 %v605_v23 }
  0x1d   :  { %555 = vmatprep.subr.bf16.mxu1 %v647_v2 }
  0x1f   :  { %516 = vmatpush3.bf16.msra.mxu0 %v606_v25 }
  0x20   :  { %556 = vmatpush3.bf16.msra.mxu1 %v609_v26  ;;  %561 = vmatprep.subr.bf16.mxu0 %v647_v2 }
  0x21   :  { %10 = vsyncpa [#allocation4], 0  ;;  %v612_v30 = vld [vmem:[%s823_s3 + $0x8] sm:$0xff]   ;;  %v613_v31 = vld [vmem:[%s823_s3 + $0x10] sm:$0xff]  }
  0x22   :  { %272 = vmatmul.mubr.bf16.vlgmr.msra.gmra.mrb[0].mxu0 %v465_v29  ;;  %v614_v32 = vld [vmem:[%s823_s3 + $0x18] sm:$0xff]   ;;  %v615_v33 = vld [vmem:[%s823_s3 + $0x20] sm:$0xff]   ;;  %v616_v34 = vld [vmem:[%s823_s3 + $0x28] sm:$0xff]  }
  0x23   :  { %558 = vmatmul.mubr.bf16.vlgmr.msra.gmra.mrb[0].mxu1 %v610_v27  ;;  %562 = vmatpush3.bf16.msra.mxu0 %v611_v28  ;;  %v617_v35 = vld [vmem:[%s823_s3 + $0x30] sm:$0xff]   ;;  %v618_v36 = vld [vmem:[%s823_s3 + $0x38] sm:$0xff]   ;;  %v464_v39 = vld [vmem:[%s822_s2] ss:$0 sm:$0xff]  ;;  %s649_s2 = smov [#allocation3]  }
  0x24   :  { %563 = vmatprep.subr.bf16.mxu0 %v647_v2  ;;  %577 = vmatprep.mubr.msk.bf16.mxu0 %vm648_vm0, %v647_v2  ;;  %v500_v51 = vld [vmem:[%s824_s4] ss:$0 sm:$0xff]  ;;  %s456_s12 = sshll.u32 %s649_s2, 4  ;;  %s457_s12 = int_to_ptr.vmem [resolvable:$true] %s456_s12 }
  0x25   :  { %s623_s4 = scalar_lea.vmem %s457_s12, 128  ;;  %p628_p1 = scmp.lt.s32.totalorder %s457_s12, %s457_s12 }
  0x26   :  { %p624_p0 = scmp.ne.s32.totalorder %s457_s12, %s623_s4  ;;  %p629_p2 = scmp.lt.s32.totalorder %s623_s4, %s623_s4 }
  0x27   :  { %564 = vmatpush3.bf16.msra.mxu0 %v612_v30 }
  0x28   :  { %565 = vmatprep.subr.bf16.mxu0 %v647_v2  ;;  %p630_p3 = por %p629_p2, %p628_p1 }
  0x2a   :  { %p631_p4 = pnand %p630_p3, %p624_p0 }
  0x2b   :  { %566 = vmatpush3.bf16.msra.mxu0 %v613_v31 }
  0x2c   :  { %567 = vmatprep.subr.bf16.mxu0 %v647_v2 }
  0x2f   :  { %568 = vmatpush3.bf16.msra.mxu0 %v614_v32 }
  0x30   :  { %569 = vmatprep.subr.bf16.mxu0 %v647_v2 }
  0x33   :  { %570 = vmatpush3.bf16.msra.mxu0 %v615_v33 }
  0x34   :  { %571 = vmatprep.subr.bf16.mxu0 %v647_v2 }
  0x37   :  { %572 = vmatpush3.bf16.msra.mxu0 %v616_v34 }
  0x38   :  { %573 = vmatprep.subr.bf16.mxu0 %v647_v2 }
  0x3b   :  { %574 = vmatpush3.bf16.msra.mxu0 %v617_v35 }
  0x3c   :  { %575 = vmatprep.subr.bf16.mxu0 %v647_v2 }
  0x3f   :  { %576 = vmatpush3.bf16.msra.mxu0 %v618_v36 }
  0xf5   :  { %v517_v37 = vpop.f32.mrb[0].mxu0 }
  0xf6   :  { %v518_v38 = vpop.f32.mrb[1].mxu0  ;;  %v313_v40 = vpop.f32.mrb[0].mxu1 }
  0xf7   :  { %v519_v41 = vadd.f32 %v518_v38, %v517_v37  ;;  %v520_v42 = vpop.f32.mrb[2].mxu0  ;;  %v559_v43 = vpop.f32.mrb[1].mxu1 }
  0xf8   :  { %v521_v44 = vpop.f32.mrb[3].mxu0  ;;  %v316_v45 = vpop.f32.mrb[2].mxu1 }
  0xf9   :  { %v274_v46 = vadd.f32 %v519_v41, %v464_v39  ;;  %v560_v47 = vpop.f32.mrb[3].mxu1 }
  0xfb   :  { %v314_v48 = vadd.f32 %v313_v40, %v274_v46 }
  0xfd   :  { %v319_v49 = vmax.f32 %v314_v48, 0.0 }
  0xff   :  { %v321_v50 = vpack.c.bf16 %v319_v49, %v319_v49 }
 0x101   :  { %578 = vmatmul.mubr.bf16.vlgmr.msra.gmra.mrb[4].mxu0 %v321_v50 }
 0x1d4   :  { %v420_v52 = vpop.f32.mrb[4].mxu0 }
 0x1d5   :  { %v439_v53 = vadd.f32 %v500_v51, %v420_v52  ;;  %v579_v54 = vpop.f32.mrb[5].mxu0 }
 0x1d6   :  { %v423_v55 = vpop.f32.mrb[6].mxu0 }
 0x1d7   :  { %440 = vmax.xlane.f32.xlu0 %v439_v53  ;;  %v580_v56 = vpop.f32.mrb[7].mxu0 }
 0x264   :  { %v441_v57 = vpop.xlane.xlu0 %440 }
 0x265   :  { %v442_v58 = vsub.f32 %v439_v53, %v441_v57 }
 0x267   :  { %v443_v59 = vmul.f32 1.442695, %v442_v58 }
 0x269   :  { %619 = vpow2.f32 %v443_v59 }
 0x273   :  { %v620_v60 = vpop.eup %619 }
 0x274   :  { %445 = vadd.xlane.f32.xlu0 %v620_v60 }
 0x301   :  { %v446_v61 = vpop.xlane.xlu0 %445 }
 0x302   :  { %621 = vrcp.f32 %v446_v61 }
 0x30c   :  { %v622_v62 = vpop.eup %621 }
 0x30d   :  { %v448_v63 = vmul.f32 %v622_v62, %v620_v60 }
 0x30f   :  { %449 = vst [vmem:[#allocation3] sm:$0xff] %v448_v63 }
 0x310   :  { %634 = shalt.err (!%p631_p4)
}
 0x311   :  { %s635_s15 = scalar_lea.hbm %s825_s5, 128 }
 0x312   :  { %p636_p5 = scmp.ne.s32.totalorder %s825_s5, %s635_s15  ;;  %p639_p6 = scmp.lt.u32.totalorder %s635_s15, %s825_s5 }
 0x314   :  { %p641_p7 = pnand %p639_p6, %p636_p5 }
 0x316   :  { %644 = shalt.err (!%p641_p7)
}
 0x317   :  { %459 = dma.vmem_to_hbm [thread:$0]  %s457_s12, 128, %s825_s5, [#allocation4]  }
 0x318   :  { %645 = dma.done.wait [#allocation4], 128  }
 0x319   :  { %646 = vsyncadd [#allocation4], 4294967168 }
 0x31a   :  { %463 = vsyncpa [#allocation4], 1 }

// kernel: concat_net_forward.4
= control target key start
LH: loop header
LB: loop body
LE: loop exit
PB: predicated region body
PF: predicated region fallthrough
CT: control target
= control target key end

     0   :  { %s1365_s21 = smov 0   ;;  %s1576_s0 = inlined_call_operand.vmem [shape: f32[8,16,128], index: 0, kind: input, shape index: {}]   ;;  %s1577_s1 = inlined_call_operand.vmem [shape: f32[8,1,128], index: 1, kind: input, shape index: {}]   ;;  %s1578_s2 = inlined_call_operand.vmem [shape: bf16[128,128], index: 2, kind: input, shape index: {}]   ;;  %s1579_s3 = inlined_call_operand.vmem [shape: f32[1,128], index: 3, kind: input, shape index: {}]   ;;  %s1580_s4 = inlined_call_operand.vmem [shape: bf16[128,2], index: 4, kind: input, shape index: {}]   ;;  %s1581_s5 = inlined_call_operand.vmem [shape: f32[1,2], index: 5, kind: input, shape index: {}]   ;;  %s1582_s6 = inlined_call_operand.vmem [shape: f32[8,2,128], index: 6, kind: output, shape index: {}]  }
   0x1 LB: > { %s1109_s22 = sadd.s32 4294967295, %s1326_s21   ;;  %p1113_p0 = scmp.ge.s32.totalorder %s1326_s21, 1  ;;  %s1326_s21 = sphi %s1365_s21, %s16_s21  }
   0x2   : > { %p224_p1 = scmp.lt.s32.totalorder %s1326_s21, 3 }
   0x4   : > { %p225_p2 = pnand %p1113_p0, %p224_p1 }
   0x5   : > { %s1114_s23 = sshll.u32 (!%p225_p2), %s1109_s22, 2  ;;  %v1264_v0 = vld [vmem:[%s1578_s2] sm:$0xff] (!%p225_p2)   ;;  %v1265_v1 = vld [vmem:[%s1578_s2 + $0x8] sm:$0xff] (!%p225_p2)   ;;  %v1266_v2 = vld [vmem:[%s1578_s2 + $0x10] sm:$0xff] (!%p225_p2)   ;;  %v1328_v24 = vmov (!%p225_p2), 0.0   ;;  %vm658_vm0 = vcmask (!%p225_p2), 15360  }
   0x6   : > { %228 = sbr.rel (%p225_p2) target bundleno = 1300 (0x514), region = 44  ;;  %p260_p3 = scmp.lt.s32.totalorder (!%p225_p2), %s1114_s23, 7  ;;  %1181 = vmatprep.subr.bf16.mxu0 (!%p225_p2), %v1264_v0  ;;  %v1267_v19 = vld [vmem:[%s1578_s2 + $0x18] sm:$0xff] (!%p225_p2)   ;;  %v1268_v20 = vld [vmem:[%s1578_s2 + $0x20] sm:$0xff] (!%p225_p2)   ;;  %v1269_v21 = vld [vmem:[%s1578_s2 + $0x28] sm:$0xff] (!%p225_p2)   ;;  %vm1329_vm1 = vmmov (!%p225_p2), 0  }
   0x7   : > { %1182 = vmatpush3.bf16.msra.mxu0 (!%p225_p2), %v1264_v0  ;;  %v1270_v22 = vld [vmem:[%s1578_s2 + $0x30] sm:$0xff] (!%p225_p2)   ;;  %v1271_v23 = vld [vmem:[%s1578_s2 + $0x38] sm:$0xff] (!%p225_p2)   ;;  %v1272_v25 = vld [vmem:[%s1580_s4] sm:$0xff] (!%p225_p2)   ;;  %vm819_vm2 = vcmask (!%p225_p2), 130048  }
   0x8   : > { %1183 = vmatprep.subr.bf16.mxu0 (!%p225_p2), %v1265_v1  ;;  %v1273_v26 = vld [vmem:[%s1580_s4 + $0x8] sm:$0xff] (!%p225_p2)   ;;  %1205 = vmatprep.subr.bf16.mxu1 (!%p225_p2), %v1272_v25  ;;  %v1274_v27 = vld [vmem:[%s1580_s4 + $0x10] sm:$0xff] (!%p225_p2)   ;;  %v1275_v28 = vld [vmem:[%s1580_s4 + $0x18] sm:$0xff] (!%p225_p2)  }
   0x9   : > { %1206 = vmatpush3.bf16.msra.mxu1 (!%p225_p2), %v1272_v25  ;;  %v1276_v29 = vld [vmem:[%s1580_s4 + $0x20] sm:$0xff] (!%p225_p2)  }
   0xa   : > { %1207 = vmatprep.subr.bf16.mxu1 (!%p225_p2), %v1273_v26 }
   0xb   : > { %1184 = vmatpush3.bf16.msra.mxu0 (!%p225_p2), %v1265_v1 }
   0xc   : > { %1185 = vmatprep.subr.bf16.mxu0 (!%p225_p2), %v1266_v2 }
   0xd   : > { %s1584_s23 = smov (!%p260_p3, %s1114_s23), 7  ;;  %1208 = vmatpush3.bf16.msra.mxu1 %v1273_v26 }
   0xe   : > { %s1148_s30 = sshll.u32 %s1584_s23, 4  ;;  %1209 = vmatprep.subr.bf16.mxu1 %v1274_v27  ;;  %s269_s16 = scalar_lea.vmem %s1577_s1, %s1584_s23 }
   0xf   : > { %s264_s9 = scalar_lea.vmem %s1576_s0, %s1148_s30  ;;  %1186 = vmatpush3.bf16.msra.mxu0 %v1266_v2  ;;  %v1277_v2 = vld [vmem:[%s1580_s4 + $0x28] sm:$0xff]   ;;  %s1119_s22 = sshll.u32 %s1584_s23, 1 }
  0x10   : > { %v1388_v3 = vld [vmem:[%s264_s9 + $0x10] sm:$0xff]  ;;  %v1390_v4 = vld [vmem:[%s264_s9] sm:$0xff]  ;;  %v1392_v5 = vld [vmem:[%s264_s9 + $0x18] sm:$0xff]  ;;  %1187 = vmatprep.subr.bf16.mxu0 %v1267_v19  ;;  %s275_s26 = scalar_lea.vmem %s1582_s6, %s1119_s22 }
  0x11   : > { %v288_v6 = vmul.f32 %v1388_v3, %v1388_v3  ;;  %v286_v7 = vmul.f32 %v1390_v4, %v1390_v4  ;;  %v1398_v8 = vld [vmem:[%s264_s9 + $0x8] sm:$0xff]  ;;  %v1402_v10 = vld [vmem:[%s264_s9 + $0x20] sm:$0xff]  ;;  %v289_v11 = vmul.f32 %v1392_v5, %v1392_v5  ;;  %v1412_v15 = vld [vmem:[%s264_s9 + $0x38] sm:$0xff]  ;;  %1210 = vmatpush3.bf16.msra.mxu1 %v1274_v27 }
  0x12   : > { %v1400_v9 = vld [vmem:[%s264_s9 + $0x28] sm:$0xff]  ;;  %v287_v12 = vmul.f32 %v1398_v8, %v1398_v8  ;;  %v290_v14 = vmul.f32 %v1402_v10, %v1402_v10  ;;  %v1414_v16 = vld [vmem:[%s264_s9 + $0x30] sm:$0xff]  ;;  %v293_v17 = vmul.f32 %v1412_v15, %v1412_v15  ;;  %1211 = vmatprep.subr.bf16.mxu1 %v1275_v28 }
  0x13   : > { %298 = vadd.xlane.f32.xlu1 %v288_v6  ;;  %294 = vadd.xlane.f32.xlu0 %v286_v7  ;;  %v291_v13 = vmul.f32 %v1400_v9, %v1400_v9  ;;  %v292_v18 = vmul.f32 %v1414_v16, %v1414_v16  ;;  %v1130_v7 = vld [vmem:[%s269_s16 + $0x1] ss:$0 sm:$0xff] }
  0x14   : > { %1188 = vmatpush3.bf16.msra.mxu0 %v1267_v19 }
  0x15   : > { %1189 = vmatprep.subr.bf16.mxu0 %v1268_v20  ;;  %1212 = vmatpush3.bf16.msra.mxu1 %v1275_v28 }
  0x16   : > { %1213 = vmatprep.subr.bf16.mxu1 %v1276_v29 }
  0x17   : > { %300 = vadd.xlane.f32.xlu1 %v289_v11  ;;  %296 = vadd.xlane.f32.xlu0 %v287_v12 }
  0x18   : > { %1190 = vmatpush3.bf16.msra.mxu0 %v1268_v20 }
  0x19   : > { %1191 = vmatprep.subr.bf16.mxu0 %v1269_v21  ;;  %1214 = vmatpush3.bf16.msra.mxu1 %v1276_v29  ;;  %v1131_v29 = vld [vmem:[%s269_s16 + $0x2] ss:$0 sm:$0xff] }
  0x1a   : > { %1215 = vmatprep.subr.bf16.mxu1 %v1277_v2 }
  0x1b   : > { %304 = vadd.xlane.f32.xlu1 %v291_v13  ;;  %302 = vadd.xlane.f32.xlu0 %v290_v14 }
  0x1c   : > { %1192 = vmatpush3.bf16.msra.mxu0 %v1269_v21 }
  0x1d   : > { %1193 = vmatprep.subr.bf16.mxu0 %v1270_v22  ;;  %1216 = vmatpush3.bf16.msra.mxu1 %v1277_v2 }
  0x1f   : > { %308 = vadd.xlane.f32.xlu1 %v293_v17  ;;  %306 = vadd.xlane.f32.xlu0 %v292_v18 }
  0x20   : > { %1194 = vmatpush3.bf16.msra.mxu0 %v1270_v22 }
  0x21   : > { %1195 = vmatprep.subr.bf16.mxu0 %v1271_v23 }
  0x24   : > { %1196 = vmatpush3.bf16.msra.mxu0 %v1271_v23  ;;  %v1132_v23 = vld [vmem:[%s269_s16 + $0x3] ss:$0 sm:$0xff] }
  0x25   : > { %1229 = vmatprep.subr.bf16.mxu0 %v1328_v24 }
  0xa0   : > { %v299_v30 = vpop.xlane.xlu1 %298  ;;  %v295_v31 = vpop.xlane.xlu0 %294 }
  0xa1   : > { %v312_v32 = vmax.f32 %v299_v30, 1e-24  ;;  %v310_v33 = vmax.f32 %v295_v31, 1e-24 }
  0xa3   : > { %1280 = vrsqrt.f32 %v312_v32 }
  0xa4   : > { %v301_v34 = vpop.xlane.xlu1 %300  ;;  %v297_v35 = vpop.xlane.xlu0 %296  ;;  %1282 = vrsqrt.f32 %v310_v33 }
  0xa5   : > { %v313_v36 = vmax.f32 %v301_v34, 1e-24  ;;  %v311_v37 = vmax.f32 %v297_v35, 1e-24 }
  0xa7   : > { %1284 = vrsqrt.f32 %v313_v36 }
  0xa8   : > { %1286 = vrsqrt.f32 %v311_v37  ;;  %v305_v38 = vpop.xlane.xlu1 %304  ;;  %v303_v39 = vpop.xlane.xlu0 %302 }
  0xa9   : > { %v315_v40 = vmax.f32 %v305_v38, 1e-24  ;;  %v314_v41 = vmax.f32 %v303_v39, 1e-24 }
  0xab   : > { %1288 = vrsqrt.f32 %v315_v40 }
  0xac   : > { %1290 = vrsqrt.f32 %v314_v41  ;;  %v309_v42 = vpop.xlane.xlu1 %308  ;;  %v307_v43 = vpop.xlane.xlu0 %306 }
  0xad   : > { %v317_v44 = vmax.f32 %v309_v42, 1e-24  ;;  %v316_v45 = vmax.f32 %v307_v43, 1e-24  ;;  %v1281_v46 = vpop.eup %1280 }
  0xae   : > { %v1283_v47 = vpop.eup %1282  ;;  %v328_v50 = vmul.f32 %v1281_v46, %v1388_v3  ;;  %v1278_v3 = vld [vmem:[%s1580_s4 + $0x30] sm:$0xff]  }
  0xaf   : > { %1292 = vrsqrt.f32 %v317_v44  ;;  %v326_v52 = vmul.f32 %v1283_v47, %v1390_v4  ;;  %1217 = vmatprep.subr.bf16.mxu1 %v1278_v3  ;;  %v1279_v4 = vld [vmem:[%s1580_s4 + $0x38] sm:$0xff]   ;;  %v1133_v47 = vld [vmem:[%s1581_s5] ss:$0 sm:$0xff] }
  0xb0   : > { %1294 = vrsqrt.f32 %v316_v45  ;;  %1218 = vmatpush3.bf16.msra.mxu1 %v1278_v3 }
  0xb1   : > { %v1285_v48 = vpop.eup %1284  ;;  %1219 = vmatprep.subr.bf16.mxu1 %v1279_v4 }
  0xb2   : > { %v1287_v49 = vpop.eup %1286  ;;  %v329_v51 = vmul.f32 %v1285_v48, %v1392_v5  ;;  %v1120_v5 = vld [vmem:[%s1579_s3] ss:$0 sm:$0xff] }
  0xb3   : > { %v327_v53 = vmul.f32 %v1287_v49, %v1398_v8 }
  0xb4   : > { %v1455_v54 = vpack.c.bf16 %v329_v51, %v328_v50  ;;  %1220 = vmatpush3.bf16.msra.mxu1 %v1279_v4 }
  0xb5   : > { %v1289_v55 = vpop.eup %1288  ;;  %v334_v56 = vpack.c.bf16 %v327_v53, %v326_v52  ;;  %1235 = vmatprep.subr.bf16.mxu1 %v1328_v24 }
  0xb6   : > { %v1291_v57 = vpop.eup %1290  ;;  %v331_v58 = vmul.f32 %v1289_v55, %v1400_v9 }
  0xb7   : > { %1197 = vmatprep.mubr.bf16.mxu0 %v334_v56  ;;  %v330_v59 = vmul.f32 %v1291_v57, %v1402_v10  ;;  %v1129_v10 = vld [vmem:[%s269_s16] ss:$0 sm:$0xff] }
  0xb8   : > { %1198 = vmatmul.mubr.bf16.vlgmr.msra.gmra.mrb[0].mxu0 %v1455_v54 }
  0xb9   : > { %v1293_v60 = vpop.eup %1292  ;;  %1230 = vmatpush3.bf16.msra.mxu0 %v334_v56  ;;  %v1460_v61 = vpack.c.bf16 %v331_v58, %v330_v59 }
  0xba   : > { %v1295_v62 = vpop.eup %1294  ;;  %v333_v63 = vmul.f32 %v1293_v60, %v1412_v15  ;;  %1241 = vmatprep.subr.bf16.mxu0 %v1328_v24 }
  0xbb   : > { %1201 = vmatprep.mubr.bf16.mxu0 %v1460_v61  ;;  %v332_v0 = vmul.f32 %v1295_v62, %v1414_v16 }
  0xbd   : > { %v1466_v1 = vpack.c.bf16 %v333_v63, %v332_v0 }
  0xc0   : > { %1202 = vmatmul.mubr.bf16.gmra.mrb[4].mxu0 %v1466_v1 }
  0xc1   : > { %1231 = vmatprep.mubr.msk.bf16.mxu0 %vm1329_vm1, %v1328_v24 }
 0x18b   : > { %v1199_v6 = vpop.f32.mrb[0].mxu0 }
 0x18c   : > { %v452_v8 = vadd.f32 %v1199_v6, %v1120_v5  ;;  %v443_v9 = vpop.f32.mrb[1].mxu0 }
 0x18d   : > { %v444_v11 = vadd.f32 %v1120_v5, %v443_v9  ;;  %v1200_v12 = vpop.f32.mrb[2].mxu0 }
 0x18e   : > { %v504_v13 = vadd.f32 %v1130_v7, %v452_v8  ;;  %v455_v14 = vadd.f32 %v1200_v12, %v1120_v5  ;;  %v446_v15 = vpop.f32.mrb[3].mxu0 }
 0x18f   : > { %v447_v16 = vadd.f32 %v1120_v5, %v446_v15  ;;  %v502_v17 = vadd.f32 %v1129_v10, %v444_v11 }
 0x190   : > { %v505_v18 = vadd.f32 %v1130_v7, %v455_v14  ;;  %v512_v20 = vmax.f32 %v504_v13, 0.0 }
 0x191   : > { %v503_v19 = vadd.f32 %v1129_v10, %v447_v16  ;;  %v510_v25 = vmax.f32 %v502_v17, 0.0 }
 0x192   : > { %v513_v21 = vmax.f32 %v505_v18, 0.0 }
 0x193   : > { %v1203_v22 = vpop.f32.mrb[4].mxu0  ;;  %v511_v26 = vmax.f32 %v503_v19, 0.0 }
 0x194   : > { %v468_v27 = vadd.f32 %v1203_v22, %v1120_v5  ;;  %v459_v28 = vpop.f32.mrb[5].mxu0  ;;  %v519_v30 = vpack.c.bf16 %v513_v21, %v512_v20 }
 0x195   : > { %v460_v31 = vadd.f32 %v1120_v5, %v459_v28  ;;  %v1204_v32 = vpop.f32.mrb[6].mxu0  ;;  %v518_v33 = vpack.c.bf16 %v511_v26, %v510_v25 }
 0x196   : > { %v508_v34 = vadd.f32 %v1132_v23, %v468_v27  ;;  %v471_v35 = vadd.f32 %v1204_v32, %v1120_v5  ;;  %v462_v36 = vpop.f32.mrb[7].mxu0 }
 0x197   : > { %v506_v37 = vadd.f32 %v1131_v29, %v460_v31  ;;  %v463_v38 = vadd.f32 %v1120_v5, %v462_v36  ;;  %1221 = vmatprep.mubr.bf16.mxu1 %v518_v33 }
 0x198   : > { %v509_v39 = vadd.f32 %v1132_v23, %v471_v35  ;;  %1222 = vmatmul.mubr.bf16.vlgmr.msra.gmra.mrb[0].mxu1 %v519_v30  ;;  %v516_v41 = vmax.f32 %v508_v34, 0.0 }
 0x199   : > { %v507_v40 = vadd.f32 %v1131_v29, %v463_v38  ;;  %1236 = vmatpush3.bf16.msra.mxu1 %v1455_v54  ;;  %v514_v43 = vmax.f32 %v506_v37, 0.0 }
 0x19a   : > { %v517_v42 = vmax.f32 %v509_v39, 0.0  ;;  %1247 = vmatprep.subr.bf16.mxu1 %v1328_v24 }
 0x19b   : > { %v515_v44 = vmax.f32 %v507_v40, 0.0 }
 0x19c   : > { %v521_v45 = vpack.c.bf16 %v517_v42, %v516_v41 }
 0x19d   : > { %v520_v46 = vpack.c.bf16 %v515_v44, %v514_v43 }
 0x19f   : > { %1225 = vmatprep.mubr.bf16.mxu1 %v520_v46 }
 0x1a0   : > { %1226 = vmatmul.mubr.bf16.gmra.mrb[4].mxu1 %v521_v45 }
 0x1a1   : > { %1237 = vmatprep.mubr.msk.bf16.mxu1 %vm1329_vm1, %v1328_v24 }
 0x26b   : > { %v1223_v48 = vpop.f32.mrb[0].mxu1 }
 0x26c   : > { %v636_v49 = vadd.f32 %v1223_v48, %v1133_v47  ;;  %v627_v50 = vpop.f32.mrb[1].mxu1 }
 0x26d   : > { %v1224_v51 = vpop.f32.mrb[2].mxu1  ;;  %v1491_v52 = vadd.f32 %v1133_v47, %v627_v50 }
 0x26e   : > { %v639_v53 = vadd.f32 %v1224_v51, %v1133_v47  ;;  %v630_v54 = vpop.f32.mrb[3].mxu1  ;;  %v665_v55 = vsel %vm658_vm0, %v636_v49, -inf }
 0x26f   : > { %666 = vmax.xlane.f32.xlu0 %v665_v55  ;;  %v1494_v56 = vadd.f32 %v1133_v47, %v630_v54  ;;  %v659_v58 = vsel %vm658_vm0, %v1491_v52, -inf }
 0x270   : > { %v668_v57 = vsel %vm658_vm0, %v639_v53, -inf }
 0x271   : > { %669 = vmax.xlane.f32.xlu1 %v668_v57  ;;  %v662_v62 = vsel %vm658_vm0, %v1494_v56, -inf }
 0x273   : > { %660 = vmax.xlane.f32.xlu0 %v659_v58  ;;  %v1227_v59 = vpop.f32.mrb[4].mxu1 }
 0x274   : > { %v643_v60 = vpop.f32.mrb[5].mxu1  ;;  %v1503_v3 = vadd.f32 %v1227_v59, %v1133_v47 }
 0x275   : > { %v1501_v63 = vadd.f32 %v1133_v47, %v643_v60  ;;  %663 = vmax.xlane.f32.xlu1 %v662_v62  ;;  %v1228_v0 = vpop.f32.mrb[6].mxu1 }
 0x276   : > { %v646_v2 = vpop.f32.mrb[7].mxu1  ;;  %v1507_v6 = vadd.f32 %v1228_v0, %v1133_v47  ;;  %v677_v8 = vsel %vm658_vm0, %v1503_v3, -inf }
 0x277   : > { %v647_v4 = vadd.f32 %v1133_v47, %v646_v2  ;;  %v671_v5 = vsel %vm658_vm0, %v1501_v63, -inf }
 0x278   : > { %672 = vmax.xlane.f32.xlu0 %v671_v5  ;;  %v680_v9 = vsel %vm658_vm0, %v1507_v6, -inf }
 0x279   : > { %v674_v7 = vsel %vm658_vm0, %v647_v4, -inf }
 0x27a   : > { %675 = vmax.xlane.f32.xlu1 %v674_v7 }
 0x27c   : > { %678 = vmax.xlane.f32.xlu0 %v677_v8 }
 0x27e   : > { %681 = vmax.xlane.f32.xlu1 %v680_v9 }
 0x2fc   : > { %v667_v10 = vpop.xlane.xlu0 %666 }
 0x2fe   : > { %v670_v11 = vpop.xlane.xlu1 %669 }
 0x2ff   : > { %v690_v12 = vmax.f32 %v667_v10, %v670_v11 }
 0x300   : > { %v661_v13 = vpop.xlane.xlu0 %660 }
 0x301   : > { %v691_v14 = vrot.slane %v690_v12, 4 }
 0x302   : > { %v664_v15 = vpop.xlane.xlu1 %663 }
 0x303   : > { %v692_v16 = vmax.f32 %v690_v12, %v691_v14  ;;  %v683_v17 = vmax.f32 %v661_v13, %v664_v15 }
 0x305   : > { %v693_v18 = vrot.slane %v692_v16, 2  ;;  %v684_v19 = vrot.slane %v683_v17, 4  ;;  %v673_v20 = vpop.xlane.xlu0 %672 }
 0x307   : > { %v694_v21 = vmax.f32 %v692_v16, %v693_v18  ;;  %v685_v22 = vmax.f32 %v683_v17, %v684_v19  ;;  %v676_v23 = vpop.xlane.xlu1 %675 }
 0x308   : > { %v697_v25 = vmax.f32 %v673_v20, %v676_v23 }
 0x309   : > { %v695_v26 = vrot.slane %v694_v21, 1  ;;  %v686_v27 = vrot.slane %v685_v22, 2  ;;  %v679_v31 = vpop.xlane.xlu0 %678 }
 0x30a   : > { %v698_v28 = vrot.slane %v697_v25, 4 }
 0x30b   : > { %v696_v29 = vmax.f32 %v694_v21, %v695_v26  ;;  %v687_v30 = vmax.f32 %v685_v22, %v686_v27  ;;  %v682_v32 = vpop.xlane.xlu1 %681 }
 0x30c   : > { %v699_v33 = vmax.f32 %v697_v25, %v698_v28  ;;  %v704_v34 = vmax.f32 %v679_v31, %v682_v32 }
 0x30d   : > { %v713_v35 = vsub.f32 %v636_v49, %v696_v29  ;;  %v714_v36 = vsub.f32 %v639_v53, %v696_v29  ;;  %v688_v37 = vrot.slane %v687_v30, 1 }
 0x30e   : > { %v700_v38 = vrot.slane %v699_v33, 2  ;;  %v705_v39 = vrot.slane %v704_v34, 4 }
 0x30f   : > { %v723_v40 = vmul.f32 1.442695, %v713_v35  ;;  %v725_v41 = vmul.f32 1.442695, %v714_v36  ;;  %v689_v42 = vmax.f32 %v687_v30, %v688_v37 }
 0x310   : > { %v701_v43 = vmax.f32 %v699_v33, %v700_v38  ;;  %v706_v44 = vmax.f32 %v704_v34, %v705_v39 }
 0x311   : > { %1296 = vpow2.f32 %v723_v40  ;;  %v711_v45 = vsub.f32 %v1491_v52, %v689_v42  ;;  %v712_v46 = vsub.f32 %v1494_v56, %v689_v42 }
 0x312   : > { %1298 = vpow2.f32 %v725_v41  ;;  %v702_v47 = vrot.slane %v701_v43, 1  ;;  %v707_v48 = vrot.slane %v706_v44, 2 }
 0x313   : > { %v719_v50 = vmul.f32 1.442695, %v711_v45  ;;  %v721_v51 = vmul.f32 1.442695, %v712_v46 }
 0x314   : > { %v703_v49 = vmax.f32 %v701_v43, %v702_v47  ;;  %v708_v53 = vmax.f32 %v706_v44, %v707_v48 }
 0x315   : > { %1300 = vpow2.f32 %v719_v50 }
 0x316   : > { %1302 = vpow2.f32 %v721_v51  ;;  %v715_v54 = vsub.f32 %v1501_v63, %v703_v49  ;;  %v716_v55 = vsub.f32 %v647_v4, %v703_v49  ;;  %v709_v57 = vrot.slane %v708_v53, 1 }
 0x318   : > { %v727_v58 = vmul.f32 1.442695, %v715_v54  ;;  %v729_v59 = vmul.f32 1.442695, %v716_v55  ;;  %v710_v60 = vmax.f32 %v708_v53, %v709_v57 }
 0x31a   : > { %1304 = vpow2.f32 %v727_v58  ;;  %v717_v52 = vsub.f32 %v1503_v3, %v710_v60  ;;  %v718_v56 = vsub.f32 %v1507_v6, %v710_v60 }
 0x31b   : > { %v1519_v62 = vpop.eup %1296  ;;  %1306 = vpow2.f32 %v729_v59 }
 0x31c   : > { %v1521_v0 = vpop.eup %1298  ;;  %v731_v2 = vmul.f32 1.442695, %v717_v52  ;;  %v733_v5 = vmul.f32 1.442695, %v718_v56  ;;  %v741_v63 = vsel %vm658_vm0, %v1519_v62, 0.0 }
 0x31d   : > { %v744_v4 = vsel %vm658_vm0, %v1521_v0, 0.0  ;;  %742 = vadd.xlane.f32.xlu0 %v741_v63 }
 0x31e   : > { %1308 = vpow2.f32 %v731_v2  ;;  %745 = vadd.xlane.f32.xlu1 %v744_v4 }
 0x31f   : > { %v1527_v7 = vpop.eup %1300  ;;  %1310 = vpow2.f32 %v733_v5 }
 0x320   : > { %v1529_v3 = vpop.eup %1302  ;;  %v735_v6 = vsel %vm658_vm0, %v1527_v7, 0.0 }
 0x321   : > { %v738_v8 = vsel %vm658_vm0, %v1529_v3, 0.0  ;;  %736 = vadd.xlane.f32.xlu0 %v735_v6 }
 0x322   : > { %739 = vadd.xlane.f32.xlu1 %v738_v8 }
 0x324   : > { %v1535_v9 = vpop.eup %1304 }
 0x325   : > { %v1537_v10 = vpop.eup %1306  ;;  %v747_v11 = vsel %vm658_vm0, %v1535_v9, 0.0 }
 0x326   : > { %v750_v12 = vsel %vm658_vm0, %v1537_v10, 0.0  ;;  %748 = vadd.xlane.f32.xlu0 %v747_v11 }
 0x327   : > { %751 = vadd.xlane.f32.xlu1 %v750_v12 }
 0x328   : > { %v1543_v13 = vpop.eup %1308 }
 0x329   : > { %v1545_v14 = vpop.eup %1310  ;;  %v753_v15 = vsel %vm658_vm0, %v1543_v13, 0.0 }
 0x32a   : > { %v756_v16 = vsel %vm658_vm0, %v1545_v14, 0.0  ;;  %754 = vadd.xlane.f32.xlu0 %v753_v15 }
 0x32b   : > { %757 = vadd.xlane.f32.xlu1 %v756_v16 }
 0x3aa   : > { %v743_v17 = vpop.xlane.xlu0 %742 }
 0x3ab   : > { %v746_v18 = vpop.xlane.xlu1 %745 }
 0x3ac   : > { %v766_v19 = vadd.f32 %v746_v18, %v743_v17 }
 0x3ae   : > { %v767_v20 = vrot.slane %v766_v19, 4  ;;  %v737_v21 = vpop.xlane.xlu0 %736 }
 0x3af   : > { %v740_v22 = vpop.xlane.xlu1 %739 }
 0x3b0   : > { %v768_v23 = vadd.f32 %v767_v20, %v766_v19  ;;  %v759_v25 = vadd.f32 %v740_v22, %v737_v21 }
 0x3b2   : > { %v769_v26 = vrot.slane %v768_v23, 2  ;;  %v760_v27 = vrot.slane %v759_v25, 4 }
 0x3b3   : > { %v749_v28 = vpop.xlane.xlu0 %748 }
 0x3b4   : > { %v770_v29 = vadd.f32 %v769_v26, %v768_v23  ;;  %v761_v30 = vadd.f32 %v760_v27, %v759_v25  ;;  %v752_v31 = vpop.xlane.xlu1 %751 }
 0x3b5   : > { %v773_v32 = vadd.f32 %v752_v31, %v749_v28 }
 0x3b6   : > { %v771_v33 = vrot.slane %v770_v29, 1  ;;  %v762_v34 = vrot.slane %v761_v30, 2 }
 0x3b7   : > { %v774_v35 = vrot.slane %v773_v32, 4  ;;  %v755_v36 = vpop.xlane.xlu0 %754 }
 0x3b8   : > { %v772_v37 = vadd.f32 %v771_v33, %v770_v29  ;;  %v763_v38 = vadd.f32 %v762_v34, %v761_v30  ;;  %v758_v39 = vpop.xlane.xlu1 %757 }
 0x3b9   : > { %v775_v40 = vadd.f32 %v774_v35, %v773_v32  ;;  %v780_v41 = vadd.f32 %v758_v39, %v755_v36 }
 0x3ba   : > { %1312 = vrcp.f32 %v772_v37  ;;  %v764_v42 = vrot.slane %v763_v38, 1 }
 0x3bb   : > { %v776_v43 = vrot.slane %v775_v40, 2  ;;  %v781_v44 = vrot.slane %v780_v41, 4 }
 0x3bc   : > { %v765_v45 = vadd.f32 %v764_v42, %v763_v38 }
 0x3bd   : > { %v777_v46 = vadd.f32 %v776_v43, %v775_v40  ;;  %v782_v47 = vadd.f32 %v781_v44, %v780_v41 }
 0x3be   : > { %1314 = vrcp.f32 %v765_v45 }
 0x3bf   : > { %v778_v48 = vrot.slane %v777_v46, 1  ;;  %v783_v50 = vrot.slane %v782_v47, 2 }
 0x3c1   : > { %v779_v51 = vadd.f32 %v778_v48, %v777_v46  ;;  %v784_v49 = vadd.f32 %v783_v50, %v782_v47 }
 0x3c3   : > { %1316 = vrcp.f32 %v779_v51  ;;  %v785_v53 = vrot.slane %v784_v49, 1 }
 0x3c4   : > { %v1313_v54 = vpop.eup %1312 }
 0x3c5   : > { %v786_v55 = vadd.f32 %v785_v53, %v784_v49  ;;  %v793_v57 = vmul.f32 %v1313_v54, %v1519_v62  ;;  %v794_v58 = vmul.f32 %v1313_v54, %v1521_v0 }
 0x3c7   : > { %1318 = vrcp.f32 %v786_v55  ;;  %v800_v59 = vpack.c.bf16 %v794_v58, %v793_v57 }
 0x3c8   : > { %v1315_v60 = vpop.eup %1314 }
 0x3c9   : > { %863 = vxpose.xlu1.c.b16.start.end [1/1] (short) (narrow) %v800_v59, 16  ;;  %v791_v52 = vmul.f32 %v1315_v60, %v1527_v7  ;;  %v792_v56 = vmul.f32 %v1315_v60, %v1529_v3 }
 0x3cb   : > { %v799_v2 = vpack.c.bf16 %v792_v56, %v791_v52 }
 0x3cd   : > { %v1317_v5 = vpop.eup %1316  ;;  %803 = vxpose.xlu0.c.b16.start.end [1/1] (short) (narrow) %v799_v2, 16 }
 0x3ce   : > { %v795_v63 = vmul.f32 %v1317_v5, %v1535_v9  ;;  %v796_v4 = vmul.f32 %v1317_v5, %v1537_v10 }
 0x3d0   : > { %v801_v6 = vpack.c.bf16 %v796_v4, %v795_v63 }
 0x3d1   : > { %v1319_v8 = vpop.eup %1318 }
 0x3d2   : > { %922 = vxpose.xlu0.c.b16.start.end [1/1] (short) (narrow) %v801_v6, 16  ;;  %v797_v62 = vmul.f32 %v1319_v8, %v1543_v13  ;;  %v798_v0 = vmul.f32 %v1319_v8, %v1545_v14 }
 0x3d4   : > { %v802_v11 = vpack.c.bf16 %v798_v0, %v797_v62 }
 0x3d6   : > { %981 = vxpose.xlu1.c.b16.start.end [1/1] (short) (narrow) %v802_v11, 16 }
 0x42f   : > { %v871_v7 = vpop.trf.xlu1 }
 0x430   : > { %1238 = vmatmul.mubr.msk.bf16.vlgmr.msra.gmra.mrb[8].mxu1 %vm819_vm2, %v871_v7 }
 0x431   : > { %1248 = vmatpush3.bf16.msra.mxu1 %v1466_v1  ;;  %1249 = vmatprep.mubr.msk.bf16.mxu1 %vm1329_vm1, %v1328_v24 }
 0x433   : > { %v811_v3 = vpop.trf.xlu0 }
 0x434   : > { %1232 = vmatmul.mubr.msk.bf16.vlgmr.msra.gmra.mrb[8].mxu0 %vm819_vm2, %v811_v3 }
 0x435   : > { %1242 = vmatpush3.bf16.msra.mxu0 %v1460_v61  ;;  %1243 = vmatprep.mubr.msk.bf16.mxu0 %vm1329_vm1, %v1328_v24 }
 0x438   : > { %v930_v9 = vpop.trf.xlu0 }
 0x43c   : > { %v989_v10 = vpop.trf.xlu1  ;;  %1244 = vmatmul.mubr.msk.bf16.vlgmr.msra.gmra.mrb[12].mxu0 %vm819_vm2, %v930_v9 }
 0x43d   : > { %1250 = vmatmul.mubr.msk.bf16.vlgmr.msra.gmra.mrb[12].mxu1 %vm819_vm2, %v989_v10 }
 0x503   : > { %v916_v12 = vpop.f32.mrb[8].mxu1 }
 0x504   : > { %v1239_v13 = vpop.f32.mrb[9].mxu1  ;;  %1041 = vst [vmem:[%s275_s26 + $0x2] sm:$0x3] %v916_v12 }
 0x505   : > { %v919_v1 = vpop.f32.mrb[10].mxu1 }
 0x506   : > { %v1240_v14 = vpop.f32.mrb[11].mxu1 }
 0x507   : > { %v857_v15 = vpop.f32.mrb[8].mxu0 }
 0x508   : > { %1040 = vst [vmem:[%s275_s26] sm:$0x3] %v857_v15  ;;  %v1233_v16 = vpop.f32.mrb[9].mxu0 }
 0x509   : > { %v860_v61 = vpop.f32.mrb[10].mxu0 }
 0x50a   : > { %v1234_v17 = vpop.f32.mrb[11].mxu0 }
 0x50f   : > { %v975_v24 = vpop.f32.mrb[12].mxu0 }
 0x510   : > { %1042 = vst [vmem:[%s275_s26 + $0x4] sm:$0x3] %v975_v24  ;;  %v1245_v18 = vpop.f32.mrb[13].mxu0  ;;  %v1034_v19 = vpop.f32.mrb[12].mxu1 }
 0x511   : > { %1043 = vst [vmem:[%s275_s26 + $0x6] sm:$0x3] %v1034_v19  ;;  %v978_v20 = vpop.f32.mrb[14].mxu0  ;;  %v1251_v21 = vpop.f32.mrb[13].mxu1 }
 0x512   : > { %v1246_v22 = vpop.f32.mrb[15].mxu0  ;;  %v1037_v23 = vpop.f32.mrb[14].mxu1 }
 0x513   : > { %v1252_v25 = vpop.f32.mrb[15].mxu1 }
 0x514 PF: > { %s16_s21 = sadd.s32 1, %s1326_s21  }
 0x515   : > { %p13_p4 = scmp.ge.s32.totalorder %s16_s21, 4  }
 0x517   :  { %15 = sbr.rel (!%p13_p4) target bundleno = 1 (0x1), region = 77 }

// kernel: concat_net_forward.3
= control target key start
LH: loop header
LB: loop body
LE: loop exit
PB: predicated region body
PF: predicated region fallthrough
CT: control target
= control target key end

     0   :  { %v2789_v1 = vmov 0   ;;  %vm94_vm0 = vcmask 261120   ;;  %v255_v61 = vlaneseq  ;;  %vm1938_vm1 = vmmov 0   ;;  %s2781_s1 = inlined_call_operand.vmem [shape: bf16[32,512], index: 1, kind: input, shape index: {}]   ;;  %s2782_s2 = inlined_call_operand.vmem [shape: bf16[128,512], index: 2, kind: input, shape index: {}]   ;;  %s2783_s0 = inlined_call_operand.vmem [shape: f32[8,8,32], index: 0, kind: input, shape index: {}]   ;;  %s2784_s3 = inlined_call_operand.vmem [shape: f32[1,512], index: 3, kind: input, shape index: {}]   ;;  %s2785_s4 = inlined_call_operand.vmem [shape: bf16[128,128], index: 4, kind: input, shape index: {}]   ;;  %s2786_s6 = inlined_call_operand.vmem [shape: f32[8,128], index: 6, kind: output, shape index: {0}]   ;;  %s2787_s5 = inlined_call_operand.vmem [shape: f32[1,128], index: 5, kind: input, shape index: {}]   ;;  %s2788_s7 = inlined_call_operand.vmem [shape: f32[8,128], index: 7, kind: output, shape index: {1}]  }
   0x1   :  { %v1692_v0 = vld [vmem:[%s2781_s1 + $0x4] ss:$16 sps:$4 sm:$0xff]   ;;  %139 = vmatprep.mubr.bf16.mxu0 %v2789_v1  ;;  %212 = vmatprep.mubr.bf16.mxu1 %v2789_v1  ;;  %v1694_v2 = vld [vmem:[%s2781_s1] ss:$16 sps:$4 sm:$0xff]   ;;  %v1695_v3 = vld [vmem:[%s2781_s1 + $0xc] ss:$16 sps:$4 sm:$0xff]  }
   0x2   :  { %107 = vmatprep.subr.bf16.mxu0 %v1692_v0  ;;  %v1697_v4 = vld [vmem:[%s2781_s1 + $0x8] ss:$16 sps:$4 sm:$0xff]   ;;  %v1698_v5 = vld [vmem:[%s2781_s1 + $0x24] ss:$16 sps:$4 sm:$0xff]   ;;  %v1700_v6 = vld [vmem:[%s2781_s1 + $0x20] ss:$16 sps:$4 sm:$0xff]   ;;  %180 = vmatprep.subr.bf16.mxu1 %v1695_v3 }
   0x3   :  { %108 = vmatpush1.bf16.msra.mxu0 %v1694_v2  ;;  %v1701_v7 = vld [vmem:[%s2781_s1 + $0x2c] ss:$16 sps:$4 sm:$0xff]   ;;  %181 = vmatpush1.bf16.msra.mxu1 %v1697_v4  ;;  %v1703_v8 = vld [vmem:[%s2781_s1 + $0x28] ss:$16 sps:$4 sm:$0xff]   ;;  %v2008_v9 = vld [vmem:[%s2782_s2 + $0x4] ss:$16 sps:$4 sm:$0xff]  }
   0x4   :  { %109 = vmatprep.subr.bf16.mxu0 %v1698_v5  ;;  %182 = vmatprep.subr.bf16.mxu1 %v1701_v7  ;;  %v26_v10 = vld [vmem:[%s2783_s0] sm:$0xff]  ;;  %v27_v11 = vld [vmem:[%s2783_s0 + $0x8] sm:$0xff]  ;;  %v28_v13 = vld [vmem:[%s2783_s0 + $0x10] sm:$0xff]  ;;  %v256_v62 = vshrl.u32 %v255_v61, 7 }
   0x5   :  { %1760 = vtanh.f32 %v26_v10  ;;  %v2020_v12 = vld [vmem:[%s2782_s2 + $0xc] ss:$16 sps:$4 sm:$0xff]   ;;  %v2032_v15 = vld [vmem:[%s2782_s2] ss:$16 sps:$4 sm:$0xff]   ;;  %v2037_v17 = vld [vmem:[%s2782_s2 + $0x8] ss:$16 sps:$4 sm:$0xff]  }
   0x6   :  { %1762 = vtanh.f32 %v27_v11  ;;  %v29_v14 = vld [vmem:[%s2783_s0 + $0x18] sm:$0xff]  ;;  %v2042_v19 = vld [vmem:[%s2782_s2 + $0x24] ss:$16 sps:$4 sm:$0xff]   ;;  %v31_v21 = vld [vmem:[%s2783_s0 + $0x28] sm:$0xff]  ;;  %v265_v63 = vsub.s32 2, %v256_v62  ;;  %v269_v0 = vsub.s32 3, %v256_v62 }
   0x7   :  { %110 = vmatpush1.bf16.msra.mxu0 %v1700_v6  ;;  %183 = vmatpush1.bf16.msra.mxu1 %v1703_v8  ;;  %1764 = vtanh.f32 %v28_v13  ;;  %v30_v20 = vld [vmem:[%s2783_s0 + $0x20] sm:$0xff]  ;;  %v2053_v23 = vld [vmem:[%s2782_s2 + $0x2c] ss:$16 sps:$4 sm:$0xff]   ;;  %v2065_v25 = vld [vmem:[%s2782_s2 + $0x28] ss:$16 sps:$4 sm:$0xff]   ;;  %v257_v2 = vsub.s32 0, %v256_v62 }
   0x8   :  { %535 = vmatprep.subr.bf16.mxu0 %v2008_v9  ;;  %576 = vmatprep.subr.bf16.mxu1 %v2020_v12  ;;  %1766 = vtanh.f32 %v29_v14  ;;  %v2060_v24 = vld [vmem:[%s2782_s2 + $0x20] ss:$16 sps:$4 sm:$0xff]   ;;  %v2072_v26 = vld [vmem:[%s2782_s2 + $0x44] ss:$16 sps:$4 sm:$0xff]   ;;  %v2079_v28 = vld [vmem:[%s2782_s2 + $0x4c] ss:$16 sps:$4 sm:$0xff]  }
   0x9   :  { %1768 = vtanh.f32 %v30_v20  ;;  %v32_v30 = vld [vmem:[%s2783_s0 + $0x30] sm:$0xff]  ;;  %v33_v32 = vld [vmem:[%s2783_s0 + $0x38] sm:$0xff]  ;;  %v253_v3 = vld [vmem:[%s2784_s3] sm:$0xf]  ;;  %v261_v4 = vsub.s32 1, %v256_v62 }
   0xa   :  { %1770 = vtanh.f32 %v31_v21  ;;  %v2094_v33 = vld [vmem:[%s2782_s2 + $0x40] ss:$16 sps:$4 sm:$0xff]   ;;  %v2099_v34 = vld [vmem:[%s2782_s2 + $0x48] ss:$16 sps:$4 sm:$0xff]   ;;  %v2106_v35 = vld [vmem:[%s2782_s2 + $0x64] ss:$16 sps:$4 sm:$0xff]   ;;  %v2278_v5 = vrot.slane %v253_v3, %v265_v63  ;;  %v2284_v8 = vrot.slane %v253_v3, %v269_v0  ;;  %v258_v10 = vrot.slane %v253_v3, %v257_v2 }
   0xb   :  { %v2111_v36 = vld [vmem:[%s2782_s2 + $0x6c] ss:$16 sps:$4 sm:$0xff]   ;;  %1772 = vtanh.f32 %v32_v30  ;;  %v2120_v39 = vld [vmem:[%s2782_s2 + $0x60] ss:$16 sps:$4 sm:$0xff]   ;;  %v2125_v40 = vld [vmem:[%s2782_s2 + $0x68] ss:$16 sps:$4 sm:$0xff]   ;;  %v262_v14 = vrot.slane %v253_v3, %v261_v4 }
   0xc   :  { %1774 = vtanh.f32 %v33_v32  ;;  %v2132_v41 = vld [vmem:[%s2782_s2 + $0x84] ss:$16 sps:$4 sm:$0xff]   ;;  %v2137_v42 = vld [vmem:[%s2782_s2 + $0x8c] ss:$16 sps:$4 sm:$0xff]   ;;  %v2146_v44 = vld [vmem:[%s2782_s2 + $0x80] ss:$16 sps:$4 sm:$0xff]  }
   0xd   :  { %v2151_v45 = vld [vmem:[%s2782_s2 + $0x88] ss:$16 sps:$4 sm:$0xff]   ;;  %v2158_v46 = vld [vmem:[%s2782_s2 + $0xa4] ss:$16 sps:$4 sm:$0xff]   ;;  %v2163_v47 = vld [vmem:[%s2782_s2 + $0xac] ss:$16 sps:$4 sm:$0xff]  }
   0xe   :  { %v2172_v50 = vld [vmem:[%s2782_s2 + $0xa0] ss:$16 sps:$4 sm:$0xff]   ;;  %v2177_v51 = vld [vmem:[%s2782_s2 + $0xa8] ss:$16 sps:$4 sm:$0xff]   ;;  %v2184_v52 = vld [vmem:[%s2782_s2 + $0xc4] ss:$16 sps:$4 sm:$0xff]  }
   0xf   :  { %v1761_v16 = vpop.eup %1760  ;;  %v2189_v53 = vld [vmem:[%s2782_s2 + $0xcc] ss:$16 sps:$4 sm:$0xff]   ;;  %v2198_v55 = vld [vmem:[%s2782_s2 + $0xc0] ss:$16 sps:$4 sm:$0xff]   ;;  %v2203_v56 = vld [vmem:[%s2782_s2 + $0xc8] ss:$16 sps:$4 sm:$0xff]  }
  0x10   :  { %v1763_v18 = vpop.eup %1762  ;;  %v2210_v57 = vld [vmem:[%s2782_s2 + $0xe4] ss:$16 sps:$4 sm:$0xff]   ;;  %v2215_v58 = vld [vmem:[%s2782_s2 + $0xec] ss:$16 sps:$4 sm:$0xff]   ;;  %v2224_v59 = vld [vmem:[%s2782_s2 + $0xe0] ss:$16 sps:$4 sm:$0xff]  }
  0x11   :  { %v42_v22 = vpack.c.bf16 %v1763_v18, %v1761_v16  ;;  %v1765_v27 = vpop.eup %1764  ;;  %v2229_v60 = vld [vmem:[%s2782_s2 + $0xe8] ss:$16 sps:$4 sm:$0xff]  }
  0x12   :  { %v1767_v29 = vpop.eup %1766 }
  0x13   :  { %1587 = vmatmul.mubr.msk.bf16.vlgmr.msra.gmra.mrb[0].mxu0 %vm94_vm0, %v42_v22  ;;  %1591 = vmatmul.mubr.msk.bf16.vlgmr.msra.gmra.mrb[0].mxu1 %vm94_vm0, %v42_v22  ;;  %v43_v31 = vpack.c.bf16 %v1767_v29, %v1765_v27  ;;  %v1769_v37 = vpop.eup %1768 }
  0x14   :  { %536 = vmatpush1.bf16.msra.mxu0 %v2032_v15  ;;  %577 = vmatpush1.bf16.msra.mxu1 %v2037_v17  ;;  %v1771_v38 = vpop.eup %1770 }
  0x15   :  { %537 = vmatprep.subr.bf16.mxu0 %v2042_v19  ;;  %578 = vmatprep.subr.bf16.mxu1 %v2053_v23  ;;  %v44_v43 = vpack.c.bf16 %v1771_v38, %v1769_v37  ;;  %v1773_v48 = vpop.eup %1772 }
  0x16   :  { %149 = vmatprep.mubr.bf16.mxu0 %v2789_v1  ;;  %222 = vmatprep.mubr.bf16.mxu1 %v2789_v1  ;;  %v1775_v49 = vpop.eup %1774 }
  0x17   :  { %v45_v54 = vpack.c.bf16 %v1775_v49, %v1773_v48 }
  0x18   :  { %538 = vmatpush1.bf16.msra.mxu0 %v2060_v24  ;;  %579 = vmatpush1.bf16.msra.mxu1 %v2065_v25 }
  0x19   :  { %539 = vmatprep.subr.bf16.mxu0 %v2072_v26  ;;  %580 = vmatprep.subr.bf16.mxu1 %v2079_v28 }
  0x1b   :  { %1588 = vmatmul.mubr.msk.bf16.gmra.mrb[4].mxu0 %vm94_vm0, %v43_v31  ;;  %1592 = vmatmul.mubr.msk.bf16.gmra.mrb[4].mxu1 %vm94_vm0, %v43_v31 }
  0x1c   :  { %540 = vmatpush1.bf16.msra.mxu0 %v2094_v33  ;;  %581 = vmatpush1.bf16.msra.mxu1 %v2099_v34 }
  0x1d   :  { %541 = vmatprep.subr.bf16.mxu0 %v2106_v35  ;;  %582 = vmatprep.subr.bf16.mxu1 %v2111_v36 }
  0x1e   :  { %159 = vmatprep.mubr.bf16.mxu0 %v2789_v1  ;;  %232 = vmatprep.mubr.bf16.mxu1 %v2789_v1 }
  0x20   :  { %542 = vmatpush1.bf16.msra.mxu0 %v2120_v39  ;;  %583 = vmatpush1.bf16.msra.mxu1 %v2125_v40 }
  0x21   :  { %543 = vmatprep.subr.bf16.mxu0 %v2132_v41  ;;  %584 = vmatprep.subr.bf16.mxu1 %v2137_v42 }
  0x23   :  { %1589 = vmatmul.mubr.msk.bf16.gmra.mrb[8].mxu0 %vm94_vm0, %v44_v43  ;;  %1593 = vmatmul.mubr.msk.bf16.gmra.mrb[8].mxu1 %vm94_vm0, %v44_v43 }
  0x24   :  { %544 = vmatpush1.bf16.msra.mxu0 %v2146_v44  ;;  %585 = vmatpush1.bf16.msra.mxu1 %v2151_v45 }
  0x25   :  { %545 = vmatprep.subr.bf16.mxu0 %v2158_v46  ;;  %586 = vmatprep.subr.bf16.mxu1 %v2163_v47 }
  0x26   :  { %169 = vmatprep.mubr.bf16.mxu0 %v2789_v1  ;;  %242 = vmatprep.mubr.bf16.mxu1 %v2789_v1 }
  0x28   :  { %546 = vmatpush1.bf16.msra.mxu0 %v2172_v50  ;;  %587 = vmatpush1.bf16.msra.mxu1 %v2177_v51 }
  0x29   :  { %547 = vmatprep.subr.bf16.mxu0 %v2184_v52  ;;  %588 = vmatprep.subr.bf16.mxu1 %v2189_v53 }
  0x2b   :  { %1590 = vmatmul.mubr.msk.bf16.gmra.mrb[12].mxu0 %vm94_vm0, %v45_v54  ;;  %1594 = vmatmul.mubr.msk.bf16.gmra.mrb[12].mxu1 %vm94_vm0, %v45_v54 }
  0x2c   :  { %548 = vmatpush1.bf16.msra.mxu0 %v2198_v55  ;;  %589 = vmatpush1.bf16.msra.mxu1 %v2203_v56 }
  0x2d   :  { %549 = vmatprep.subr.bf16.mxu0 %v2210_v57  ;;  %590 = vmatprep.subr.bf16.mxu1 %v2215_v58 }
  0x2e   :  { %567 = vmatprep.mubr.bf16.mxu0 %v2789_v1  ;;  %608 = vmatprep.mubr.bf16.mxu1 %v2789_v1 }
  0x30   :  { %550 = vmatpush1.bf16.msra.mxu0 %v2224_v59  ;;  %591 = vmatpush1.bf16.msra.mxu1 %v2229_v60 }
  0x31   :  { %651 = vmatprep.subr.bf16.mxu0 %v2008_v9  ;;  %692 = vmatprep.subr.bf16.mxu1 %v2020_v12 }
  0x33   :  { %568 = vmatmul.mubr.bf16.vlgmr.msra.gmra.mrb[16].mxu0 %v2789_v1  ;;  %609 = vmatmul.mubr.bf16.vlgmr.msra.gmra.mrb[16].mxu1 %v2789_v1 }
  0x34   :  { %652 = vmatpush1.bf16.msra.mxu0 %v2032_v15  ;;  %693 = vmatpush1.bf16.msra.mxu1 %v2037_v17 }
  0x35   :  { %653 = vmatprep.subr.bf16.mxu0 %v2042_v19  ;;  %694 = vmatprep.subr.bf16.mxu1 %v2053_v23 }
  0x36   :  { %683 = vmatprep.mubr.bf16.mxu0 %v2789_v1  ;;  %724 = vmatprep.mubr.bf16.mxu1 %v2789_v1 }
  0x38   :  { %654 = vmatpush1.bf16.msra.mxu0 %v2060_v24  ;;  %695 = vmatpush1.bf16.msra.mxu1 %v2065_v25 }
  0x39   :  { %655 = vmatprep.subr.bf16.mxu0 %v2072_v26  ;;  %696 = vmatprep.subr.bf16.mxu1 %v2079_v28 }
  0x3c   :  { %656 = vmatpush1.bf16.msra.mxu0 %v2094_v33  ;;  %697 = vmatpush1.bf16.msra.mxu1 %v2099_v34 }
  0x3d   :  { %657 = vmatprep.subr.bf16.mxu0 %v2106_v35  ;;  %698 = vmatprep.subr.bf16.mxu1 %v2111_v36 }
  0x40   :  { %658 = vmatpush1.bf16.msra.mxu0 %v2120_v39  ;;  %699 = vmatpush1.bf16.msra.mxu1 %v2125_v40 }
  0x41   :  { %659 = vmatprep.subr.bf16.mxu0 %v2132_v41  ;;  %700 = vmatprep.subr.bf16.mxu1 %v2137_v42 }
  0x44   :  { %660 = vmatpush1.bf16.msra.mxu0 %v2146_v44  ;;  %701 = vmatpush1.bf16.msra.mxu1 %v2151_v45 }
  0x45   :  { %661 = vmatprep.subr.bf16.mxu0 %v2158_v46  ;;  %702 = vmatprep.subr.bf16.mxu1 %v2163_v47 }
  0x48   :  { %662 = vmatpush1.bf16.msra.mxu0 %v2172_v50  ;;  %703 = vmatpush1.bf16.msra.mxu1 %v2177_v51 }
  0x49   :  { %663 = vmatprep.subr.bf16.mxu0 %v2184_v52  ;;  %704 = vmatprep.subr.bf16.mxu1 %v2189_v53 }
  0x4c   :  { %664 = vmatpush1.bf16.msra.mxu0 %v2198_v55  ;;  %705 = vmatpush1.bf16.msra.mxu1 %v2203_v56 }
  0x4d   :  { %665 = vmatprep.subr.bf16.mxu0 %v2210_v57  ;;  %706 = vmatprep.subr.bf16.mxu1 %v2215_v58 }
  0x50   :  { %666 = vmatpush1.bf16.msra.mxu0 %v2224_v59  ;;  %707 = vmatpush1.bf16.msra.mxu1 %v2229_v60 }
  0x51   :  { %767 = vmatprep.subr.bf16.mxu0 %v2008_v9  ;;  %808 = vmatprep.subr.bf16.mxu1 %v2020_v12 }
  0xe6   :  { %v2280_v6 = vpop.f32.mrb[0].mxu0  ;;  %v2282_v7 = vpop.f32.mrb[0].mxu1 }
  0xe7   :  { %v143_v11 = vpop.f32.mrb[1].mxu0  ;;  %v216_v13 = vpop.f32.mrb[1].mxu1 }
  0xe8   :  { %v145_v16 = vpop.f32.mrb[2].mxu0  ;;  %v218_v18 = vpop.f32.mrb[2].mxu1 }
  0xe9   :  { %v2286_v20 = vadd.f32 %v258_v10, %v145_v16  ;;  %v147_v21 = vpop.f32.mrb[3].mxu0  ;;  %v2289_v22 = vadd.f32 %v2278_v5, %v218_v18  ;;  %v220_v27 = vpop.f32.mrb[3].mxu1 }
  0xea   :  { %v2291_v29 = vadd.f32 %v262_v14, %v147_v21  ;;  %v2294_v30 = vadd.f32 %v2284_v8, %v220_v27 }
  0xee   :  { %v151_v31 = vpop.f32.mrb[4].mxu0  ;;  %v224_v32 = vpop.f32.mrb[4].mxu1 }
  0xef   :  { %v2296_v37 = vadd.f32 %v258_v10, %v151_v31  ;;  %v153_v38 = vpop.f32.mrb[5].mxu0  ;;  %v2299_v43 = vadd.f32 %v2278_v5, %v224_v32  ;;  %v226_v48 = vpop.f32.mrb[5].mxu1 }
  0xf0   :  { %v2301_v49 = vadd.f32 %v262_v14, %v153_v38  ;;  %v155_v54 = vpop.f32.mrb[6].mxu0  ;;  %v2304_v61 = vadd.f32 %v2284_v8, %v226_v48  ;;  %v228_v62 = vpop.f32.mrb[6].mxu1 }
  0xf1   :  { %v2306_v63 = vadd.f32 %v258_v10, %v155_v54  ;;  %v157_v0 = vpop.f32.mrb[7].mxu0  ;;  %v2309_v2 = vadd.f32 %v2278_v5, %v228_v62  ;;  %v230_v3 = vpop.f32.mrb[7].mxu1 }
  0xf2   :  { %2791 = vst [vmem:[#allocation3_spill] sm:$0xff] %v2304_v61  ;;  %v2311_v4 = vadd.f32 %v262_v14, %v157_v0  ;;  %v2314_v16 = vadd.f32 %v2284_v8, %v230_v3 }
  0xf3   :  { %2792 = vst [vmem:[#allocation4_spill] sm:$0xff] %v2306_v63  ;;  %2793 = vst [vmem:[#allocation5_spill] sm:$0xff] %v2309_v2 }
  0xf4   :  { %2794 = vst [vmem:[#allocation6_spill] sm:$0xff] %v2311_v4  ;;  %2795 = vst [vmem:[#allocation7_spill] sm:$0xff] %v2314_v16 }
  0xf6   :  { %v161_v18 = vpop.f32.mrb[8].mxu0  ;;  %v234_v21 = vpop.f32.mrb[8].mxu1 }
  0xf7   :  { %v2316_v27 = vadd.f32 %v258_v10, %v161_v18  ;;  %v163_v31 = vpop.f32.mrb[9].mxu0  ;;  %v2319_v32 = vadd.f32 %v2278_v5, %v234_v21  ;;  %v236_v38 = vpop.f32.mrb[9].mxu1 }
  0xf8   :  { %v2321_v48 = vadd.f32 %v262_v14, %v163_v31  ;;  %v165_v54 = vpop.f32.mrb[10].mxu0  ;;  %v2324_v62 = vadd.f32 %v2284_v8, %v236_v38  ;;  %v238_v0 = vpop.f32.mrb[10].mxu1 }
  0xf9   :  { %2796 = vst [vmem:[#allocation8_spill] sm:$0xff] %v2316_v27  ;;  %2797 = vst [vmem:[#allocation9_spill] sm:$0xff] %v2319_v32  ;;  %v2326_v1 = vadd.f32 %v258_v10, %v165_v54  ;;  %v167_v3 = vpop.f32.mrb[11].mxu0  ;;  %v2329_v16 = vadd.f32 %v2278_v5, %v238_v0  ;;  %v240_v18 = vpop.f32.mrb[11].mxu1 }
  0xfa   :  { %2798 = vst [vmem:[#allocation10_spill] sm:$0xff] %v2321_v48  ;;  %2799 = vst [vmem:[#allocation11_spill] sm:$0xff] %v2324_v62  ;;  %v2331_v27 = vadd.f32 %v262_v14, %v167_v3  ;;  %v2334_v21 = vadd.f32 %v2284_v8, %v240_v18 }
  0xfb   :  { %2800 = vst [vmem:[#allocation12_spill] sm:$0xff] %v2326_v1  ;;  %2801 = vst [vmem:[#allocation13_spill] sm:$0xff] %v2329_v16 }
  0xfc   :  { %2802 = vst [vmem:[#allocation14_spill] sm:$0xff] %v2331_v27  ;;  %2803 = vst [vmem:[#allocation15_spill] sm:$0xff] %v2334_v21 }
  0xfe   :  { %v171_v32 = vpop.f32.mrb[12].mxu0  ;;  %v244_v31 = vpop.f32.mrb[12].mxu1 }
  0xff   :  { %v2336_v48 = vadd.f32 %v258_v10, %v171_v32  ;;  %v173_v4 = vpop.f32.mrb[13].mxu0  ;;  %v2339_v38 = vadd.f32 %v2278_v5, %v244_v31  ;;  %v246_v54 = vpop.f32.mrb[13].mxu1 }
 0x100   :  { %v2341_v1 = vadd.f32 %v262_v14, %v173_v4  ;;  %v175_v62 = vpop.f32.mrb[14].mxu0  ;;  %v2344_v0 = vadd.f32 %v2284_v8, %v246_v54  ;;  %v248_v3 = vpop.f32.mrb[14].mxu1  ;;  %v275_v4 = vadd.f32 %v258_v10, %v2280_v6  ;;  %v276_v54 = vadd.f32 %v262_v14, %v143_v11 }
 0x101   :  { %2804 = vst [vmem:[#allocation16_spill] sm:$0xff] %v2336_v48  ;;  %2805 = vst [vmem:[#allocation17_spill] sm:$0xff] %v2339_v38  ;;  %v2346_v27 = vadd.f32 %v258_v10, %v175_v62  ;;  %v177_v18 = vpop.f32.mrb[15].mxu0  ;;  %v2349_v21 = vadd.f32 %v2278_v5, %v248_v3  ;;  %v250_v32 = vpop.f32.mrb[15].mxu1 }
 0x102   :  { %2806 = vst [vmem:[#allocation18_spill] sm:$0xff] %v2341_v1  ;;  %2807 = vst [vmem:[#allocation19_spill] sm:$0xff] %v2344_v0  ;;  %v2351_v48 = vadd.f32 %v262_v14, %v177_v18  ;;  %v2354_v31 = vadd.f32 %v2284_v8, %v250_v32  ;;  %v277_v1 = vadd.f32 %v2278_v5, %v2282_v7 }
 0x103   :  { %2808 = vst [vmem:[#allocation20_spill] sm:$0xff] %v2346_v27  ;;  %2809 = vst [vmem:[#allocation21_spill] sm:$0xff] %v2349_v21  ;;  %v278_v0 = vadd.f32 %v2284_v8, %v216_v13 }
 0x104   :  { %2810 = vst [vmem:[#allocation22_spill] sm:$0xff] %v2351_v48  ;;  %2811 = vst [vmem:[#allocation23_spill] sm:$0xff] %v2354_v31 }
 0x106   :  { %v569_v62 = vpop.f32.mrb[16].mxu0  ;;  %v610_v27 = vpop.f32.mrb[16].mxu1 }
 0x107   :  { %v617_v38 = vadd.f32 %v569_v62, %v275_v4  ;;  %v619_v16 = vadd.f32 %v610_v27, %v277_v1  ;;  %v571_v3 = vpop.f32.mrb[17].mxu0  ;;  %v612_v21 = vpop.f32.mrb[17].mxu1 }
 0x108   :  { %v618_v2 = vadd.f32 %v571_v3, %v276_v54  ;;  %v620_v18 = vadd.f32 %v612_v21, %v278_v0  ;;  %v573_v48 = vpop.f32.mrb[18].mxu0  ;;  %v614_v63 = vpop.f32.mrb[18].mxu1 }
 0x109   :  { %v1627_v32 = vmul.f32 -1.442695, %v617_v38  ;;  %v574_v31 = vpop.f32.mrb[19].mxu0  ;;  %v615_v61 = vpop.f32.mrb[19].mxu1 }
 0x10a   :  { %v1628_v6 = vmul.f32 -1.442695, %v618_v2  ;;  %v1629_v5 = vmul.f32 -1.442695, %v620_v18 }
 0x10b   :  { %1776 = vpow2.f32 %v1627_v32 }
 0x10c   :  { %1778 = vpow2.f32 %v1628_v6 }
 0x10d   :  { %1780 = vpow2.f32 %v1629_v5 }
 0x10e   :  { %1782 = vtanh.f32 %v619_v16  ;;  %v2812_v16 = vmov 0  }
 0x115   :  { %v1777_v7 = vpop.eup %1776 }
 0x116   :  { %v1779_v10 = vpop.eup %1778  ;;  %v624_v8 = vadd.f32 1.0, %v1777_v7 }
 0x117   :  { %v630_v11 = vadd.f32 1.0, %v1779_v10  ;;  %v1781_v1 = vpop.eup %1780 }
 0x118   :  { %1784 = vrcp.f32 %v624_v8  ;;  %v1783_v13 = vpop.eup %1782  ;;  %v637_v48 = vadd.f32 1.0, %v1781_v1 }
 0x119   :  { %1786 = vrcp.f32 %v630_v11 }
 0x11a   :  { %1788 = vrcp.f32 %v637_v48 }
 0x122   :  { %v1785_v14 = vpop.eup %1784 }
 0x123   :  { %v1787_v27 = vpop.eup %1786  ;;  %v641_v63 = vmul.f32 %v1785_v14, %v1783_v13 }
 0x124   :  { %v640_v21 = vmul.f32 0.0, %v1787_v27  ;;  %v1789_v2 = vpop.eup %1788 }
 0x126   :  { %v2360_v61 = vadd.f32 %v641_v63, %v640_v21 }
 0x128   :  { %1790 = vtanh.f32 %v2360_v61 }
 0x132   :  { %v1791_v38 = vpop.eup %1790 }
 0x133   :  { %v644_v0 = vmul.f32 %v1791_v38, %v1789_v2 }
 0x135   :  { %v650_v31 = vpack.c.bf16 %v644_v0, %v644_v0 }
 0x137   :  { %684 = vmatmul.mubr.bf16.vlgmr.msra.gmra.mrb[20].mxu0 %v650_v31  ;;  %725 = vmatmul.mubr.bf16.vlgmr.msra.gmra.mrb[20].mxu1 %v650_v31 }
 0x138   :  { %768 = vmatpush1.bf16.msra.mxu0 %v2032_v15  ;;  %809 = vmatpush1.bf16.msra.mxu1 %v2037_v17 }
 0x139   :  { %769 = vmatprep.subr.bf16.mxu0 %v2042_v19  ;;  %810 = vmatprep.subr.bf16.mxu1 %v2053_v23 }
 0x13a   :  { %799 = vmatprep.mubr.bf16.mxu0 %v2812_v16  ;;  %840 = vmatprep.mubr.bf16.mxu1 %v2812_v16 }
 0x13c   :  { %770 = vmatpush1.bf16.msra.mxu0 %v2060_v24  ;;  %811 = vmatpush1.bf16.msra.mxu1 %v2065_v25 }
 0x13d   :  { %771 = vmatprep.subr.bf16.mxu0 %v2072_v26  ;;  %812 = vmatprep.subr.bf16.mxu1 %v2079_v28 }
 0x140   :  { %772 = vmatpush1.bf16.msra.mxu0 %v2094_v33  ;;  %813 = vmatpush1.bf16.msra.mxu1 %v2099_v34 }
 0x141   :  { %773 = vmatprep.subr.bf16.mxu0 %v2106_v35  ;;  %814 = vmatprep.subr.bf16.mxu1 %v2111_v36 }
 0x144   :  { %774 = vmatpush1.bf16.msra.mxu0 %v2120_v39  ;;  %815 = vmatpush1.bf16.msra.mxu1 %v2125_v40 }
 0x145   :  { %775 = vmatprep.subr.bf16.mxu0 %v2132_v41  ;;  %816 = vmatprep.subr.bf16.mxu1 %v2137_v42 }
 0x148   :  { %776 = vmatpush1.bf16.msra.mxu0 %v2146_v44  ;;  %817 = vmatpush1.bf16.msra.mxu1 %v2151_v45 }
 0x149   :  { %777 = vmatprep.subr.bf16.mxu0 %v2158_v46  ;;  %818 = vmatprep.subr.bf16.mxu1 %v2163_v47 }
 0x14c   :  { %778 = vmatpush1.bf16.msra.mxu0 %v2172_v50  ;;  %819 = vmatpush1.bf16.msra.mxu1 %v2177_v51 }
 0x14d   :  { %779 = vmatprep.subr.bf16.mxu0 %v2184_v52  ;;  %820 = vmatprep.subr.bf16.mxu1 %v2189_v53 }
 0x150   :  { %780 = vmatpush1.bf16.msra.mxu0 %v2198_v55  ;;  %821 = vmatpush1.bf16.msra.mxu1 %v2203_v56 }
 0x151   :  { %781 = vmatprep.subr.bf16.mxu0 %v2210_v57  ;;  %822 = vmatprep.subr.bf16.mxu1 %v2215_v58 }
 0x154   :  { %782 = vmatpush1.bf16.msra.mxu0 %v2224_v59  ;;  %823 = vmatpush1.bf16.msra.mxu1 %v2229_v60 }
 0x155   :  { %883 = vmatprep.subr.bf16.mxu0 %v2008_v9  ;;  %924 = vmatprep.subr.bf16.mxu1 %v2020_v12 }
 0x20a   :  { %v685_v4 = vpop.f32.mrb[20].mxu0  ;;  %v726_v54 = vpop.f32.mrb[20].mxu1 }
 0x20b   :  { %v733_v62 = vadd.f32 %v685_v4, %v2286_v20  ;;  %v735_v3 = vadd.f32 %v726_v54, %v2289_v22  ;;  %v687_v18 = vpop.f32.mrb[21].mxu0  ;;  %v728_v32 = vpop.f32.mrb[21].mxu1 }
 0x20c   :  { %v734_v6 = vadd.f32 %v687_v18, %v2291_v29  ;;  %v736_v5 = vadd.f32 %v728_v32, %v2294_v30  ;;  %v689_v7 = vpop.f32.mrb[22].mxu0  ;;  %v730_v10 = vpop.f32.mrb[22].mxu1 }
 0x20d   :  { %v1630_v8 = vmul.f32 -1.442695, %v733_v62  ;;  %v690_v11 = vpop.f32.mrb[23].mxu0  ;;  %v731_v1 = vpop.f32.mrb[23].mxu1 }
 0x20e   :  { %v1631_v13 = vmul.f32 -1.442695, %v734_v6  ;;  %v1632_v14 = vmul.f32 -1.442695, %v736_v5 }
 0x20f   :  { %1792 = vpow2.f32 %v1630_v8  ;;  %v2813_v8 = vld [vmem:[#allocation3_spill] sm:$0xff] }
 0x210   :  { %1794 = vpow2.f32 %v1631_v13 }
 0x211   :  { %1796 = vpow2.f32 %v1632_v14 }
 0x212   :  { %1798 = vtanh.f32 %v735_v3 }
 0x219   :  { %v1793_v27 = vpop.eup %1792 }
 0x21a   :  { %v1795_v63 = vpop.eup %1794  ;;  %v740_v20 = vadd.f32 1.0, %v1793_v27 }
 0x21b   :  { %v746_v22 = vadd.f32 1.0, %v1795_v63  ;;  %v1797_v29 = vpop.eup %1796 }
 0x21c   :  { %1800 = vrcp.f32 %v740_v20  ;;  %v1799_v48 = vpop.eup %1798  ;;  %v753_v38 = vadd.f32 1.0, %v1797_v29 }
 0x21d   :  { %1802 = vrcp.f32 %v746_v22 }
 0x21e   :  { %1804 = vrcp.f32 %v753_v38 }
 0x226   :  { %v1801_v30 = vpop.eup %1800 }
 0x227   :  { %v1803_v21 = vpop.eup %1802  ;;  %v757_v2 = vmul.f32 %v1801_v30, %v1799_v48 }
 0x228   :  { %v756_v0 = vmul.f32 %v1803_v21, %v2360_v61  ;;  %v1805_v4 = vpop.eup %1804 }
 0x22a   :  { %v2402_v31 = vadd.f32 %v757_v2, %v756_v0 }
 0x22c   :  { %1806 = vtanh.f32 %v2402_v31 }
 0x236   :  { %v1807_v54 = vpop.eup %1806 }
 0x237   :  { %v760_v62 = vmul.f32 %v1807_v54, %v1805_v4 }
 0x239   :  { %v766_v3 = vpack.c.bf16 %v760_v62, %v760_v62 }
 0x23b   :  { %800 = vmatmul.mubr.bf16.vlgmr.msra.gmra.mrb[24].mxu0 %v766_v3  ;;  %841 = vmatmul.mubr.bf16.vlgmr.msra.gmra.mrb[24].mxu1 %v766_v3 }
 0x23c   :  { %884 = vmatpush1.bf16.msra.mxu0 %v2032_v15  ;;  %925 = vmatpush1.bf16.msra.mxu1 %v2037_v17 }
 0x23d   :  { %885 = vmatprep.subr.bf16.mxu0 %v2042_v19  ;;  %926 = vmatprep.subr.bf16.mxu1 %v2053_v23 }
 0x23e   :  { %915 = vmatprep.mubr.bf16.mxu0 %v2812_v16  ;;  %956 = vmatprep.mubr.bf16.mxu1 %v2812_v16 }
 0x240   :  { %886 = vmatpush1.bf16.msra.mxu0 %v2060_v24  ;;  %927 = vmatpush1.bf16.msra.mxu1 %v2065_v25 }
 0x241   :  { %887 = vmatprep.subr.bf16.mxu0 %v2072_v26  ;;  %928 = vmatprep.subr.bf16.mxu1 %v2079_v28 }
 0x244   :  { %888 = vmatpush1.bf16.msra.mxu0 %v2094_v33  ;;  %929 = vmatpush1.bf16.msra.mxu1 %v2099_v34 }
 0x245   :  { %889 = vmatprep.subr.bf16.mxu0 %v2106_v35  ;;  %930 = vmatprep.subr.bf16.mxu1 %v2111_v36 }
 0x248   :  { %890 = vmatpush1.bf16.msra.mxu0 %v2120_v39  ;;  %931 = vmatpush1.bf16.msra.mxu1 %v2125_v40 }
 0x249   :  { %891 = vmatprep.subr.bf16.mxu0 %v2132_v41  ;;  %932 = vmatprep.subr.bf16.mxu1 %v2137_v42 }
 0x24c   :  { %892 = vmatpush1.bf16.msra.mxu0 %v2146_v44  ;;  %933 = vmatpush1.bf16.msra.mxu1 %v2151_v45 }
 0x24d   :  { %893 = vmatprep.subr.bf16.mxu0 %v2158_v46  ;;  %934 = vmatprep.subr.bf16.mxu1 %v2163_v47 }
 0x250   :  { %894 = vmatpush1.bf16.msra.mxu0 %v2172_v50  ;;  %935 = vmatpush1.bf16.msra.mxu1 %v2177_v51 }
 0x251   :  { %895 = vmatprep.subr.bf16.mxu0 %v2184_v52  ;;  %936 = vmatprep.subr.bf16.mxu1 %v2189_v53 }
 0x254   :  { %896 = vmatpush1.bf16.msra.mxu0 %v2198_v55  ;;  %937 = vmatpush1.bf16.msra.mxu1 %v2203_v56 }
 0x255   :  { %897 = vmatprep.subr.bf16.mxu0 %v2210_v57  ;;  %938 = vmatprep.subr.bf16.mxu1 %v2215_v58 }
 0x258   :  { %898 = vmatpush1.bf16.msra.mxu0 %v2224_v59  ;;  %939 = vmatpush1.bf16.msra.mxu1 %v2229_v60 }
 0x259   :  { %999 = vmatprep.subr.bf16.mxu0 %v2008_v9  ;;  %1040 = vmatprep.subr.bf16.mxu1 %v2020_v12 }
 0x30e   :  { %v801_v61 = vpop.f32.mrb[24].mxu0  ;;  %v842_v18 = vpop.f32.mrb[24].mxu1 }
 0x30f   :  { %v849_v32 = vadd.f32 %v801_v61, %v2296_v37  ;;  %v851_v6 = vadd.f32 %v842_v18, %v2299_v43  ;;  %v803_v5 = vpop.f32.mrb[25].mxu0  ;;  %v844_v7 = vpop.f32.mrb[25].mxu1 }
 0x310   :  { %v850_v10 = vadd.f32 %v803_v5, %v2301_v49  ;;  %v852_v11 = vadd.f32 %v844_v7, %v2813_v8  ;;  %v805_v1 = vpop.f32.mrb[26].mxu0  ;;  %v846_v13 = vpop.f32.mrb[26].mxu1  ;;  %v2815_v7 = vld [vmem:[#allocation5_spill] sm:$0xff] }
 0x311   :  { %v1633_v14 = vmul.f32 -1.442695, %v849_v32  ;;  %v806_v27 = vpop.f32.mrb[27].mxu0  ;;  %v847_v63 = vpop.f32.mrb[27].mxu1  ;;  %v2816_v1 = vld [vmem:[#allocation6_spill] sm:$0xff] }
 0x312   :  { %v1634_v20 = vmul.f32 -1.442695, %v850_v10  ;;  %v1635_v22 = vmul.f32 -1.442695, %v852_v11 }
 0x313   :  { %1808 = vpow2.f32 %v1633_v14  ;;  %v2817_v14 = vld [vmem:[#allocation7_spill] sm:$0xff] }
 0x314   :  { %1810 = vpow2.f32 %v1634_v20 }
 0x315   :  { %1812 = vpow2.f32 %v1635_v22 }
 0x316   :  { %1814 = vtanh.f32 %v851_v6  ;;  %v2814_v6 = vld [vmem:[#allocation4_spill] sm:$0xff] }
 0x31d   :  { %v1809_v29 = vpop.eup %1808 }
 0x31e   :  { %v1811_v48 = vpop.eup %1810  ;;  %v856_v37 = vadd.f32 1.0, %v1809_v29 }
 0x31f   :  { %v862_v43 = vadd.f32 1.0, %v1811_v48  ;;  %v1813_v49 = vpop.eup %1812 }
 0x320   :  { %1816 = vrcp.f32 %v856_v37  ;;  %v1815_v30 = vpop.eup %1814  ;;  %v869_v0 = vadd.f32 1.0, %v1813_v49 }
 0x321   :  { %1818 = vrcp.f32 %v862_v43 }
 0x322   :  { %1820 = vrcp.f32 %v869_v0 }
 0x32a   :  { %v1817_v21 = vpop.eup %1816 }
 0x32b   :  { %v1819_v2 = vpop.eup %1818  ;;  %v873_v38 = vmul.f32 %v1817_v21, %v1815_v30 }
 0x32c   :  { %v872_v4 = vmul.f32 %v1819_v2, %v2402_v31  ;;  %v1821_v62 = vpop.eup %1820 }
 0x32e   :  { %v2444_v54 = vadd.f32 %v873_v38, %v872_v4 }
 0x330   :  { %1822 = vtanh.f32 %v2444_v54 }
 0x33a   :  { %v1823_v3 = vpop.eup %1822 }
 0x33b   :  { %v876_v61 = vmul.f32 %v1823_v3, %v1821_v62 }
 0x33d   :  { %v882_v18 = vpack.c.bf16 %v876_v61, %v876_v61 }
 0x33f   :  { %916 = vmatmul.mubr.bf16.vlgmr.msra.gmra.mrb[28].mxu0 %v882_v18  ;;  %957 = vmatmul.mubr.bf16.vlgmr.msra.gmra.mrb[28].mxu1 %v882_v18 }
 0x340   :  { %1000 = vmatpush1.bf16.msra.mxu0 %v2032_v15  ;;  %1041 = vmatpush1.bf16.msra.mxu1 %v2037_v17 }
 0x341   :  { %1001 = vmatprep.subr.bf16.mxu0 %v2042_v19  ;;  %1042 = vmatprep.subr.bf16.mxu1 %v2053_v23 }
 0x342   :  { %1031 = vmatprep.mubr.bf16.mxu0 %v2812_v16  ;;  %1072 = vmatprep.mubr.bf16.mxu1 %v2812_v16 }
 0x344   :  { %1002 = vmatpush1.bf16.msra.mxu0 %v2060_v24  ;;  %1043 = vmatpush1.bf16.msra.mxu1 %v2065_v25 }
 0x345   :  { %1003 = vmatprep.subr.bf16.mxu0 %v2072_v26  ;;  %1044 = vmatprep.subr.bf16.mxu1 %v2079_v28 }
 0x348   :  { %1004 = vmatpush1.bf16.msra.mxu0 %v2094_v33  ;;  %1045 = vmatpush1.bf16.msra.mxu1 %v2099_v34 }
 0x349   :  { %1005 = vmatprep.subr.bf16.mxu0 %v2106_v35  ;;  %1046 = vmatprep.subr.bf16.mxu1 %v2111_v36 }
 0x34c   :  { %1006 = vmatpush1.bf16.msra.mxu0 %v2120_v39  ;;  %1047 = vmatpush1.bf16.msra.mxu1 %v2125_v40 }
 0x34d   :  { %1007 = vmatprep.subr.bf16.mxu0 %v2132_v41  ;;  %1048 = vmatprep.subr.bf16.mxu1 %v2137_v42 }
 0x350   :  { %1008 = vmatpush1.bf16.msra.mxu0 %v2146_v44  ;;  %1049 = vmatpush1.bf16.msra.mxu1 %v2151_v45 }
 0x351   :  { %1009 = vmatprep.subr.bf16.mxu0 %v2158_v46  ;;  %1050 = vmatprep.subr.bf16.mxu1 %v2163_v47 }
 0x354   :  { %1010 = vmatpush1.bf16.msra.mxu0 %v2172_v50  ;;  %1051 = vmatpush1.bf16.msra.mxu1 %v2177_v51 }
 0x355   :  { %1011 = vmatprep.subr.bf16.mxu0 %v2184_v52  ;;  %1052 = vmatprep.subr.bf16.mxu1 %v2189_v53 }
 0x358   :  { %1012 = vmatpush1.bf16.msra.mxu0 %v2198_v55  ;;  %1053 = vmatpush1.bf16.msra.mxu1 %v2203_v56 }
 0x359   :  { %1013 = vmatprep.subr.bf16.mxu0 %v2210_v57  ;;  %1054 = vmatprep.subr.bf16.mxu1 %v2215_v58 }
 0x35c   :  { %1014 = vmatpush1.bf16.msra.mxu0 %v2224_v59  ;;  %1055 = vmatpush1.bf16.msra.mxu1 %v2229_v60 }
 0x35d   :  { %1115 = vmatprep.subr.bf16.mxu0 %v2008_v9  ;;  %1156 = vmatprep.subr.bf16.mxu1 %v2020_v12 }
 0x412   :  { %v917_v31 = vpop.f32.mrb[28].mxu0  ;;  %v958_v32 = vpop.f32.mrb[28].mxu1 }
 0x413   :  { %v965_v5 = vadd.f32 %v917_v31, %v2814_v6  ;;  %v967_v10 = vadd.f32 %v958_v32, %v2815_v7  ;;  %v919_v8 = vpop.f32.mrb[29].mxu0  ;;  %v960_v11 = vpop.f32.mrb[29].mxu1 }
 0x414   :  { %v966_v13 = vadd.f32 %v919_v8, %v2816_v1  ;;  %v968_v27 = vadd.f32 %v960_v11, %v2817_v14  ;;  %v921_v63 = vpop.f32.mrb[30].mxu0  ;;  %v962_v20 = vpop.f32.mrb[30].mxu1 }
 0x415   :  { %v1636_v22 = vmul.f32 -1.442695, %v965_v5  ;;  %v922_v29 = vpop.f32.mrb[31].mxu0  ;;  %v963_v48 = vpop.f32.mrb[31].mxu1 }
 0x416   :  { %v1637_v9 = vmul.f32 -1.442695, %v966_v13  ;;  %v1638_v12 = vmul.f32 -1.442695, %v968_v27 }
 0x417   :  { %1824 = vpow2.f32 %v1636_v22 }
 0x418   :  { %1826 = vpow2.f32 %v1637_v9 }
 0x419   :  { %1828 = vpow2.f32 %v1638_v12 }
 0x41a   :  { %1830 = vtanh.f32 %v967_v10 }
 0x421   :  { %v1825_v37 = vpop.eup %1824 }
 0x422   :  { %v1827_v43 = vpop.eup %1826  ;;  %v972_v49 = vadd.f32 1.0, %v1825_v37  ;;  %v2544_v37 = vld [vmem:[%s2782_s2] ss:$16 sps:$4 sm:$0xff]  }
 0x423   :  { %v978_v30 = vadd.f32 1.0, %v1827_v43  ;;  %v1829_v21 = vpop.eup %1828  ;;  %v2550_v43 = vld [vmem:[%s2782_s2 + $0x8] ss:$16 sps:$4 sm:$0xff]  }
 0x424   :  { %1832 = vrcp.f32 %v972_v49  ;;  %v1831_v2 = vpop.eup %1830  ;;  %v985_v62 = vadd.f32 1.0, %v1829_v21  ;;  %v2556_v49 = vld [vmem:[%s2782_s2 + $0x24] ss:$16 sps:$4 sm:$0xff]   ;;  %v2570_v21 = vld [vmem:[%s2782_s2 + $0x20] ss:$16 sps:$4 sm:$0xff]  }
 0x425   :  { %1834 = vrcp.f32 %v978_v30  ;;  %v2562_v30 = vld [vmem:[%s2782_s2 + $0x2c] ss:$16 sps:$4 sm:$0xff]  }
 0x426   :  { %1836 = vrcp.f32 %v985_v62  ;;  %v2600_v62 = vld [vmem:[%s2782_s2 + $0x48] ss:$16 sps:$4 sm:$0xff]  }
 0x42e   :  { %v1833_v38 = vpop.eup %1832 }
 0x42f   :  { %v1835_v0 = vpop.eup %1834  ;;  %v989_v4 = vmul.f32 %v1833_v38, %v1831_v2  ;;  %v2576_v2 = vld [vmem:[%s2782_s2 + $0x28] ss:$16 sps:$4 sm:$0xff]   ;;  %v2582_v38 = vld [vmem:[%s2782_s2 + $0x44] ss:$16 sps:$4 sm:$0xff]  }
 0x430   :  { %v988_v3 = vmul.f32 %v1835_v0, %v2444_v54  ;;  %v1837_v18 = vpop.eup %1836  ;;  %v2588_v0 = vld [vmem:[%s2782_s2 + $0x4c] ss:$16 sps:$4 sm:$0xff]  }
 0x432   :  { %v2486_v61 = vadd.f32 %v989_v4, %v988_v3  ;;  %v2594_v4 = vld [vmem:[%s2782_s2 + $0x40] ss:$16 sps:$4 sm:$0xff]   ;;  %v2606_v3 = vld [vmem:[%s2782_s2 + $0x64] ss:$16 sps:$4 sm:$0xff]  }
 0x434   :  { %1838 = vtanh.f32 %v2486_v61 }
 0x43e   :  { %v1839_v31 = vpop.eup %1838 }
 0x43f   :  { %v992_v32 = vmul.f32 %v1839_v31, %v1837_v18  ;;  %v2618_v18 = vld [vmem:[%s2782_s2 + $0x60] ss:$16 sps:$4 sm:$0xff]   ;;  %v2624_v31 = vld [vmem:[%s2782_s2 + $0x68] ss:$16 sps:$4 sm:$0xff]  }
 0x441   :  { %v998_v6 = vpack.c.bf16 %v992_v32, %v992_v32  ;;  %v2630_v32 = vld [vmem:[%s2782_s2 + $0x84] ss:$16 sps:$4 sm:$0xff]  }
 0x443   :  { %1032 = vmatmul.mubr.bf16.vlgmr.msra.gmra.mrb[32].mxu0 %v998_v6  ;;  %1073 = vmatmul.mubr.bf16.vlgmr.msra.gmra.mrb[32].mxu1 %v998_v6  ;;  %v2636_v6 = vld [vmem:[%s2782_s2 + $0x8c] ss:$16 sps:$4 sm:$0xff]  }
 0x444   :  { %1116 = vmatpush1.bf16.msra.mxu0 %v2032_v15  ;;  %1157 = vmatpush1.bf16.msra.mxu1 %v2037_v17  ;;  %v2524_v15 = vld [vmem:[%s2782_s2 + $0x4] ss:$16 sps:$4 sm:$0xff]   ;;  %v2530_v17 = vld [vmem:[%s2782_s2 + $0xc] ss:$16 sps:$4 sm:$0xff]  }
 0x445   :  { %1117 = vmatprep.subr.bf16.mxu0 %v2042_v19  ;;  %1158 = vmatprep.subr.bf16.mxu1 %v2053_v23 }
 0x446   :  { %1147 = vmatprep.mubr.bf16.mxu0 %v2812_v16  ;;  %1188 = vmatprep.mubr.bf16.mxu1 %v2812_v16 }
 0x448   :  { %1118 = vmatpush1.bf16.msra.mxu0 %v2060_v24  ;;  %1159 = vmatpush1.bf16.msra.mxu1 %v2065_v25  ;;  %v2818_v24 = vld [vmem:[#allocation8_spill] sm:$0xff] }
 0x449   :  { %1119 = vmatprep.subr.bf16.mxu0 %v2072_v26  ;;  %1160 = vmatprep.subr.bf16.mxu1 %v2079_v28  ;;  %v2819_v26 = vld [vmem:[#allocation9_spill] sm:$0xff] }
 0x44c   :  { %1120 = vmatpush1.bf16.msra.mxu0 %v2094_v33  ;;  %1161 = vmatpush1.bf16.msra.mxu1 %v2099_v34 }
 0x44d   :  { %1121 = vmatprep.subr.bf16.mxu0 %v2106_v35  ;;  %1162 = vmatprep.subr.bf16.mxu1 %v2111_v36  ;;  %v2820_v35 = vld [vmem:[#allocation10_spill] sm:$0xff] }
 0x450   :  { %1122 = vmatpush1.bf16.msra.mxu0 %v2120_v39  ;;  %1163 = vmatpush1.bf16.msra.mxu1 %v2125_v40  ;;  %v2821_v39 = vld [vmem:[#allocation11_spill] sm:$0xff] }
 0x451   :  { %1123 = vmatprep.subr.bf16.mxu0 %v2132_v41  ;;  %1164 = vmatprep.subr.bf16.mxu1 %v2137_v42 }
 0x454   :  { %1124 = vmatpush1.bf16.msra.mxu0 %v2146_v44  ;;  %1165 = vmatpush1.bf16.msra.mxu1 %v2151_v45 }
 0x455   :  { %1125 = vmatprep.subr.bf16.mxu0 %v2158_v46  ;;  %1166 = vmatprep.subr.bf16.mxu1 %v2163_v47 }
 0x458   :  { %1126 = vmatpush1.bf16.msra.mxu0 %v2172_v50  ;;  %1167 = vmatpush1.bf16.msra.mxu1 %v2177_v51 }
 0x459   :  { %1127 = vmatprep.subr.bf16.mxu0 %v2184_v52  ;;  %1168 = vmatprep.subr.bf16.mxu1 %v2189_v53 }
 0x45c   :  { %1128 = vmatpush1.bf16.msra.mxu0 %v2198_v55  ;;  %1169 = vmatpush1.bf16.msra.mxu1 %v2203_v56 }
 0x45d   :  { %1129 = vmatprep.subr.bf16.mxu0 %v2210_v57  ;;  %1170 = vmatprep.subr.bf16.mxu1 %v2215_v58 }
 0x460   :  { %1130 = vmatpush1.bf16.msra.mxu0 %v2224_v59  ;;  %1171 = vmatpush1.bf16.msra.mxu1 %v2229_v60 }
 0x461   :  { %1231 = vmatprep.subr.bf16.mxu0 %v2524_v15  ;;  %1272 = vmatprep.subr.bf16.mxu1 %v2530_v17 }
 0x516   :  { %v1033_v19 = vpop.f32.mrb[32].mxu0  ;;  %v1074_v23 = vpop.f32.mrb[32].mxu1 }
 0x517   :  { %v1081_v25 = vadd.f32 %v1033_v19, %v2818_v24  ;;  %v1083_v28 = vadd.f32 %v1074_v23, %v2819_v26  ;;  %v1035_v33 = vpop.f32.mrb[33].mxu0  ;;  %v1076_v34 = vpop.f32.mrb[33].mxu1  ;;  %v2642_v19 = vld [vmem:[%s2782_s2 + $0x80] ss:$16 sps:$4 sm:$0xff]   ;;  %v2648_v23 = vld [vmem:[%s2782_s2 + $0x88] ss:$16 sps:$4 sm:$0xff]  }
 0x518   :  { %v1082_v36 = vadd.f32 %v1035_v33, %v2820_v35  ;;  %v1084_v40 = vadd.f32 %v1076_v34, %v2821_v39  ;;  %v1037_v41 = vpop.f32.mrb[34].mxu0  ;;  %v1078_v42 = vpop.f32.mrb[34].mxu1  ;;  %v2654_v24 = vld [vmem:[%s2782_s2 + $0xa4] ss:$16 sps:$4 sm:$0xff]   ;;  %v2824_v33 = vld [vmem:[#allocation14_spill] sm:$0xff] }
 0x519   :  { %v1639_v44 = vmul.f32 -1.442695, %v1081_v25  ;;  %v1038_v45 = vpop.f32.mrb[35].mxu0  ;;  %v1079_v46 = vpop.f32.mrb[35].mxu1  ;;  %v2660_v25 = vld [vmem:[%s2782_s2 + $0xac] ss:$16 sps:$4 sm:$0xff]  }
 0x51a   :  { %v1640_v47 = vmul.f32 -1.442695, %v1082_v36  ;;  %v1641_v54 = vmul.f32 -1.442695, %v1084_v40  ;;  %v2823_v26 = vld [vmem:[#allocation13_spill] sm:$0xff]  ;;  %v2825_v34 = vld [vmem:[#allocation15_spill] sm:$0xff] }
 0x51b   :  { %1840 = vpow2.f32 %v1639_v44 }
 0x51c   :  { %1842 = vpow2.f32 %v1640_v47 }
 0x51d   :  { %1844 = vpow2.f32 %v1641_v54 }
 0x51e   :  { %1846 = vtanh.f32 %v1083_v28 }
 0x525   :  { %v1841_v5 = vpop.eup %1840 }
 0x526   :  { %v1843_v7 = vpop.eup %1842  ;;  %v1088_v10 = vadd.f32 1.0, %v1841_v5 }
 0x527   :  { %v1094_v8 = vadd.f32 1.0, %v1843_v7  ;;  %v1845_v11 = vpop.eup %1844 }
 0x528   :  { %1848 = vrcp.f32 %v1088_v10  ;;  %v1847_v1 = vpop.eup %1846  ;;  %v1101_v63 = vadd.f32 1.0, %v1845_v11 }
 0x529   :  { %1850 = vrcp.f32 %v1094_v8 }
 0x52a   :  { %1852 = vrcp.f32 %v1101_v63  ;;  %v1928_v63 = vld [vmem:[%s2782_s2 + $0xc4] ss:$16 sps:$4 sm:$0xff]  }
 0x532   :  { %v1849_v13 = vpop.eup %1848 }
 0x533   :  { %v1851_v14 = vpop.eup %1850  ;;  %v1105_v27 = vmul.f32 %v1849_v13, %v1847_v1 }
 0x534   :  { %v1104_v20 = vmul.f32 %v1851_v14, %v2486_v61  ;;  %v1853_v29 = vpop.eup %1852  ;;  %v2612_v61 = vld [vmem:[%s2782_s2 + $0x6c] ss:$16 sps:$4 sm:$0xff]  }
 0x536   :  { %v2538_v22 = vadd.f32 %v1105_v27, %v1104_v20  ;;  %v1927_v27 = vld [vmem:[%s2782_s2 + $0xa8] ss:$16 sps:$4 sm:$0xff]   ;;  %v1929_v20 = vld [vmem:[%s2782_s2 + $0xcc] ss:$16 sps:$4 sm:$0xff]  }
 0x538   :  { %1854 = vtanh.f32 %v2538_v22 }
 0x542   :  { %v1855_v48 = vpop.eup %1854 }
 0x543   :  { %v1108_v9 = vmul.f32 %v1855_v48, %v1853_v29  ;;  %v1931_v29 = vld [vmem:[%s2782_s2 + $0xc8] ss:$16 sps:$4 sm:$0xff]   ;;  %v1932_v48 = vld [vmem:[%s2782_s2 + $0xe4] ss:$16 sps:$4 sm:$0xff]  }
 0x545   :  { %v1114_v12 = vpack.c.bf16 %v1108_v9, %v1108_v9  ;;  %v1933_v9 = vld [vmem:[%s2782_s2 + $0xec] ss:$16 sps:$4 sm:$0xff]  }
 0x547   :  { %1148 = vmatmul.mubr.bf16.vlgmr.msra.gmra.mrb[36].mxu0 %v1114_v12  ;;  %1189 = vmatmul.mubr.bf16.vlgmr.msra.gmra.mrb[36].mxu1 %v1114_v12  ;;  %v1934_v12 = vld [vmem:[%s2782_s2 + $0xe0] ss:$16 sps:$4 sm:$0xff]  }
 0x548   :  { %1232 = vmatpush1.bf16.msra.mxu0 %v2544_v37  ;;  %1273 = vmatpush1.bf16.msra.mxu1 %v2550_v43 }
 0x549   :  { %1233 = vmatprep.subr.bf16.mxu0 %v2556_v49  ;;  %1274 = vmatprep.subr.bf16.mxu1 %v2562_v30 }
 0x54a   :  { %1263 = vmatprep.mubr.bf16.mxu0 %v2812_v16  ;;  %1304 = vmatprep.mubr.bf16.mxu1 %v2812_v16 }
 0x54c   :  { %1234 = vmatpush1.bf16.msra.mxu0 %v2570_v21  ;;  %1275 = vmatpush1.bf16.msra.mxu1 %v2576_v2 }
 0x54d   :  { %1235 = vmatprep.subr.bf16.mxu0 %v2582_v38  ;;  %1276 = vmatprep.subr.bf16.mxu1 %v2588_v0 }
 0x550   :  { %1236 = vmatpush1.bf16.msra.mxu0 %v2594_v4  ;;  %1277 = vmatpush1.bf16.msra.mxu1 %v2600_v62 }
 0x551   :  { %1237 = vmatprep.subr.bf16.mxu0 %v2606_v3  ;;  %1278 = vmatprep.subr.bf16.mxu1 %v2612_v61 }
 0x554   :  { %1238 = vmatpush1.bf16.msra.mxu0 %v2618_v18  ;;  %1279 = vmatpush1.bf16.msra.mxu1 %v2624_v31 }
 0x555   :  { %1239 = vmatprep.subr.bf16.mxu0 %v2630_v32  ;;  %1280 = vmatprep.subr.bf16.mxu1 %v2636_v6 }
 0x558   :  { %1240 = vmatpush1.bf16.msra.mxu0 %v2642_v19  ;;  %1281 = vmatpush1.bf16.msra.mxu1 %v2648_v23 }
 0x559   :  { %1241 = vmatprep.subr.bf16.mxu0 %v2654_v24  ;;  %1282 = vmatprep.subr.bf16.mxu1 %v2660_v25 }
 0x55c   :  { %1242 = vmatpush1.bf16.msra.mxu0 %v2172_v50  ;;  %1283 = vmatpush1.bf16.msra.mxu1 %v2177_v51 }
 0x55d   :  { %1243 = vmatprep.subr.bf16.mxu0 %v2184_v52  ;;  %1284 = vmatprep.subr.bf16.mxu1 %v2189_v53  ;;  %v2822_v52 = vld [vmem:[#allocation12_spill] sm:$0xff] }
 0x560   :  { %1244 = vmatpush1.bf16.msra.mxu0 %v2198_v55  ;;  %1285 = vmatpush1.bf16.msra.mxu1 %v2203_v56 }
 0x561   :  { %1245 = vmatprep.subr.bf16.mxu0 %v2210_v57  ;;  %1286 = vmatprep.subr.bf16.mxu1 %v2215_v58 }
 0x564   :  { %1246 = vmatpush1.bf16.msra.mxu0 %v2224_v59  ;;  %1287 = vmatpush1.bf16.msra.mxu1 %v2229_v60 }
 0x565   :  { %1347 = vmatprep.subr.bf16.mxu0 %v2524_v15  ;;  %1388 = vmatprep.subr.bf16.mxu1 %v2530_v17 }
 0x61a   :  { %v1149_v50 = vpop.f32.mrb[36].mxu0  ;;  %v1190_v51 = vpop.f32.mrb[36].mxu1 }
 0x61b   :  { %v1197_v53 = vadd.f32 %v1149_v50, %v2822_v52  ;;  %v1199_v55 = vadd.f32 %v1190_v51, %v2823_v26  ;;  %v1151_v28 = vpop.f32.mrb[37].mxu0  ;;  %v1192_v56 = vpop.f32.mrb[37].mxu1 }
 0x61c   :  { %v1198_v57 = vadd.f32 %v1151_v28, %v2824_v33  ;;  %v1200_v58 = vadd.f32 %v1192_v56, %v2825_v34  ;;  %v1153_v35 = vpop.f32.mrb[38].mxu0  ;;  %v1194_v59 = vpop.f32.mrb[38].mxu1 }
 0x61d   :  { %v1642_v36 = vmul.f32 -1.442695, %v1197_v53  ;;  %v1154_v60 = vpop.f32.mrb[39].mxu0  ;;  %v1195_v39 = vpop.f32.mrb[39].mxu1 }
 0x61e   :  { %v1643_v15 = vmul.f32 -1.442695, %v1198_v57  ;;  %v1644_v17 = vmul.f32 -1.442695, %v1200_v58  ;;  %v1752_v39 = vld [vmem:[%s2785_s4] sm:$0xff]  }
 0x61f   :  { %1856 = vpow2.f32 %v1642_v36 }
 0x620   :  { %1858 = vpow2.f32 %v1643_v15  ;;  %v1937_v15 = vmov 0.0  }
 0x621   :  { %1860 = vpow2.f32 %v1644_v17  ;;  %v1753_v17 = vld [vmem:[%s2785_s4 + $0x8] sm:$0xff]  }
 0x622   :  { %1862 = vtanh.f32 %v1199_v55 }
 0x629   :  { %v1857_v40 = vpop.eup %1856 }
 0x62a   :  { %v1859_v41 = vpop.eup %1858  ;;  %v1204_v42 = vadd.f32 1.0, %v1857_v40  ;;  %v1754_v40 = vld [vmem:[%s2785_s4 + $0x10] sm:$0xff]  }
 0x62b   :  { %v1210_v44 = vadd.f32 1.0, %v1859_v41  ;;  %v1861_v45 = vpop.eup %1860  ;;  %v1755_v41 = vld [vmem:[%s2785_s4 + $0x18] sm:$0xff]  }
 0x62c   :  { %1864 = vrcp.f32 %v1204_v42  ;;  %v1863_v46 = vpop.eup %1862  ;;  %v1217_v7 = vadd.f32 1.0, %v1861_v45  ;;  %v1756_v42 = vld [vmem:[%s2785_s4 + $0x20] sm:$0xff]   ;;  %v1758_v45 = vld [vmem:[%s2785_s4 + $0x30] sm:$0xff]  }
 0x62d   :  { %1866 = vrcp.f32 %v1210_v44  ;;  %v1757_v44 = vld [vmem:[%s2785_s4 + $0x28] sm:$0xff]  }
 0x62e   :  { %1868 = vrcp.f32 %v1217_v7 }
 0x636   :  { %v1865_v47 = vpop.eup %1864 }
 0x637   :  { %v1867_v54 = vpop.eup %1866  ;;  %v1221_v5 = vmul.f32 %v1865_v47, %v1863_v46  ;;  %v1759_v46 = vld [vmem:[%s2785_s4 + $0x38] sm:$0xff]  }
 0x638   :  { %v1220_v10 = vmul.f32 %v1867_v54, %v2538_v22  ;;  %v1869_v11 = vpop.eup %1868  ;;  %v1930_v22 = vld [vmem:[%s2782_s2 + $0xc0] ss:$16 sps:$4 sm:$0xff]  }
 0x63a   :  { %v2680_v8 = vadd.f32 %v1221_v5, %v1220_v10  ;;  %v2830_v5 = vld [vmem:[#allocation20_spill] sm:$0xff]  ;;  %v2831_v10 = vld [vmem:[#allocation21_spill] sm:$0xff] }
 0x63c   :  { %1870 = vtanh.f32 %v2680_v8 }
 0x646   :  { %v1871_v1 = vpop.eup %1870 }
 0x647   :  { %v1224_v13 = vmul.f32 %v1871_v1, %v1869_v11 }
 0x649   :  { %v1230_v14 = vpack.c.bf16 %v1224_v13, %v1224_v13  ;;  %v2832_v13 = vld [vmem:[#allocation22_spill] sm:$0xff] }
 0x64b   :  { %1264 = vmatmul.mubr.bf16.vlgmr.msra.gmra.mrb[40].mxu0 %v1230_v14  ;;  %1305 = vmatmul.mubr.bf16.vlgmr.msra.gmra.mrb[40].mxu1 %v1230_v14 }
 0x64c   :  { %1348 = vmatpush1.bf16.msra.mxu0 %v2544_v37  ;;  %1389 = vmatpush1.bf16.msra.mxu1 %v2550_v43  ;;  %v1935_v37 = vld [vmem:[%s2782_s2 + $0xe8] ss:$16 sps:$4 sm:$0xff]  }
 0x64d   :  { %1349 = vmatprep.subr.bf16.mxu0 %v2556_v49  ;;  %1390 = vmatprep.subr.bf16.mxu1 %v2562_v30  ;;  %v2826_v30 = vld [vmem:[#allocation16_spill] sm:$0xff] }
 0x64e   :  { %1379 = vmatprep.mubr.bf16.mxu0 %v2812_v16  ;;  %1420 = vmatprep.mubr.bf16.mxu1 %v2812_v16  ;;  %v1926_v16 = vld [vmem:[%s2782_s2 + $0xa0] ss:$16 sps:$4 sm:$0xff]  }
 0x650   :  { %1350 = vmatpush1.bf16.msra.mxu0 %v2570_v21  ;;  %1391 = vmatpush1.bf16.msra.mxu1 %v2576_v2  ;;  %v2827_v2 = vld [vmem:[#allocation17_spill] sm:$0xff] }
 0x651   :  { %1351 = vmatprep.subr.bf16.mxu0 %v2582_v38  ;;  %1392 = vmatprep.subr.bf16.mxu1 %v2588_v0 }
 0x654   :  { %1352 = vmatpush1.bf16.msra.mxu0 %v2594_v4  ;;  %1393 = vmatpush1.bf16.msra.mxu1 %v2600_v62  ;;  %v2828_v62 = vld [vmem:[#allocation18_spill] sm:$0xff] }
 0x655   :  { %1353 = vmatprep.subr.bf16.mxu0 %v2606_v3  ;;  %1394 = vmatprep.subr.bf16.mxu1 %v2612_v61  ;;  %v2829_v61 = vld [vmem:[#allocation19_spill] sm:$0xff] }
 0x658   :  { %1354 = vmatpush1.bf16.msra.mxu0 %v2618_v18  ;;  %1395 = vmatpush1.bf16.msra.mxu1 %v2624_v31 }
 0x659   :  { %1355 = vmatprep.subr.bf16.mxu0 %v2630_v32  ;;  %1396 = vmatprep.subr.bf16.mxu1 %v2636_v6 }
 0x65c   :  { %1356 = vmatpush1.bf16.msra.mxu0 %v2642_v19  ;;  %1397 = vmatpush1.bf16.msra.mxu1 %v2648_v23 }
 0x65d   :  { %1357 = vmatprep.subr.bf16.mxu0 %v2654_v24  ;;  %1398 = vmatprep.subr.bf16.mxu1 %v2660_v25 }
 0x660   :  { %1358 = vmatpush1.bf16.msra.mxu0 %v1926_v16  ;;  %1399 = vmatpush1.bf16.msra.mxu1 %v1927_v27  ;;  %v2833_v16 = vld [vmem:[#allocation23_spill] sm:$0xff] }
 0x661   :  { %1359 = vmatprep.subr.bf16.mxu0 %v1928_v63  ;;  %1400 = vmatprep.subr.bf16.mxu1 %v1929_v20 }
 0x664   :  { %1360 = vmatpush1.bf16.msra.mxu0 %v1930_v22  ;;  %1401 = vmatpush1.bf16.msra.mxu1 %v1931_v29 }
 0x665   :  { %1361 = vmatprep.subr.bf16.mxu0 %v1932_v48  ;;  %1402 = vmatprep.subr.bf16.mxu1 %v1933_v9 }
 0x668   :  { %1362 = vmatpush1.bf16.msra.mxu0 %v1934_v12  ;;  %1403 = vmatpush1.bf16.msra.mxu1 %v1935_v37 }
 0x669   :  { %1669 = vmatprep.subr.bf16.mxu0 %v1937_v15 }
 0x71e   :  { %v1265_v43 = vpop.f32.mrb[40].mxu0  ;;  %v1306_v49 = vpop.f32.mrb[40].mxu1 }
 0x71f   :  { %v1313_v21 = vadd.f32 %v1265_v43, %v2826_v30  ;;  %v1315_v38 = vadd.f32 %v1306_v49, %v2827_v2  ;;  %v1267_v0 = vpop.f32.mrb[41].mxu0  ;;  %v1308_v4 = vpop.f32.mrb[41].mxu1 }
 0x720   :  { %v1314_v3 = vadd.f32 %v1267_v0, %v2828_v62  ;;  %v1316_v18 = vadd.f32 %v1308_v4, %v2829_v61  ;;  %v1269_v31 = vpop.f32.mrb[42].mxu0  ;;  %v1310_v32 = vpop.f32.mrb[42].mxu1 }
 0x721   :  { %v1645_v6 = vmul.f32 -1.442695, %v1313_v21  ;;  %v1270_v19 = vpop.f32.mrb[43].mxu0  ;;  %v1311_v23 = vpop.f32.mrb[43].mxu1 }
 0x722   :  { %v1646_v24 = vmul.f32 -1.442695, %v1314_v3  ;;  %v1647_v25 = vmul.f32 -1.442695, %v1316_v18  ;;  %v1651_v19 = vld [vmem:[%s2787_s5] ss:$0 sm:$0xff] }
 0x723   :  { %1872 = vpow2.f32 %v1645_v6 }
 0x724   :  { %1874 = vpow2.f32 %v1646_v24 }
 0x725   :  { %1876 = vpow2.f32 %v1647_v25 }
 0x726   :  { %1878 = vtanh.f32 %v1315_v38 }
 0x72d   :  { %v1873_v50 = vpop.eup %1872 }
 0x72e   :  { %v1875_v51 = vpop.eup %1874  ;;  %v1320_v52 = vadd.f32 1.0, %v1873_v50 }
 0x72f   :  { %v1326_v53 = vadd.f32 1.0, %v1875_v51  ;;  %v1877_v26 = vpop.eup %1876 }
 0x730   :  { %1880 = vrcp.f32 %v1320_v52  ;;  %v1879_v55 = vpop.eup %1878  ;;  %v1333_v57 = vadd.f32 1.0, %v1877_v26 }
 0x731   :  { %1882 = vrcp.f32 %v1326_v53 }
 0x732   :  { %1884 = vrcp.f32 %v1333_v57 }
 0x73a   :  { %v1881_v28 = vpop.eup %1880 }
 0x73b   :  { %v1883_v56 = vpop.eup %1882  ;;  %v1337_v33 = vmul.f32 %v1881_v28, %v1879_v55 }
 0x73c   :  { %v1336_v34 = vmul.f32 %v1883_v56, %v2680_v8  ;;  %v1885_v35 = vpop.eup %1884 }
 0x73e   :  { %v2740_v58 = vadd.f32 %v1337_v33, %v1336_v34 }
 0x740   :  { %1886 = vtanh.f32 %v2740_v58 }
 0x74a   :  { %v1887_v59 = vpop.eup %1886 }
 0x74b   :  { %v1340_v36 = vmul.f32 %v1887_v59, %v1885_v35 }
 0x74d   :  { %v1346_v60 = vpack.c.bf16 %v1340_v36, %v1340_v36 }
 0x74f   :  { %1380 = vmatmul.mubr.bf16.vlgmr.msra.gmra.mrb[44].mxu0 %v1346_v60  ;;  %1421 = vmatmul.mubr.bf16.vlgmr.msra.gmra.mrb[44].mxu1 %v1346_v60 }
 0x750   :  { %1670 = vmatpush3.bf16.msra.mxu0 %v1752_v39  ;;  %1685 = vmatprep.mubr.msk.bf16.mxu0 %vm1938_vm1, %v1937_v15 }
 0x751   :  { %1671 = vmatprep.subr.bf16.mxu0 %v1937_v15 }
 0x754   :  { %1672 = vmatpush3.bf16.msra.mxu0 %v1753_v17 }
 0x755   :  { %1673 = vmatprep.subr.bf16.mxu0 %v1937_v15 }
 0x758   :  { %1674 = vmatpush3.bf16.msra.mxu0 %v1754_v40 }
 0x759   :  { %1675 = vmatprep.subr.bf16.mxu0 %v1937_v15 }
 0x75c   :  { %1676 = vmatpush3.bf16.msra.mxu0 %v1755_v41 }
 0x75d   :  { %1677 = vmatprep.subr.bf16.mxu0 %v1937_v15 }
 0x760   :  { %1678 = vmatpush3.bf16.msra.mxu0 %v1756_v42 }
 0x761   :  { %1679 = vmatprep.subr.bf16.mxu0 %v1937_v15 }
 0x764   :  { %1680 = vmatpush3.bf16.msra.mxu0 %v1757_v44 }
 0x765   :  { %1681 = vmatprep.subr.bf16.mxu0 %v1937_v15 }
 0x768   :  { %1682 = vmatpush3.bf16.msra.mxu0 %v1758_v45 }
 0x769   :  { %1683 = vmatprep.subr.bf16.mxu0 %v1937_v15 }
 0x76c   :  { %1684 = vmatpush3.bf16.msra.mxu0 %v1759_v46 }
 0x822   :  { %v1381_v47 = vpop.f32.mrb[44].mxu0  ;;  %v1422_v54 = vpop.f32.mrb[44].mxu1 }
 0x823   :  { %v1429_v7 = vadd.f32 %v1381_v47, %v2830_v5  ;;  %v1431_v8 = vadd.f32 %v1422_v54, %v2831_v10  ;;  %v1383_v11 = vpop.f32.mrb[45].mxu0  ;;  %v1424_v1 = vpop.f32.mrb[45].mxu1 }
 0x824   :  { %v1430_v14 = vadd.f32 %v1383_v11, %v2832_v13  ;;  %v1432_v27 = vadd.f32 %v1424_v1, %v2833_v16  ;;  %v1385_v63 = vpop.f32.mrb[46].mxu0  ;;  %v1426_v20 = vpop.f32.mrb[46].mxu1 }
 0x825   :  { %v1648_v22 = vmul.f32 -1.442695, %v1429_v7  ;;  %v1386_v29 = vpop.f32.mrb[47].mxu0  ;;  %v1427_v48 = vpop.f32.mrb[47].mxu1 }
 0x826   :  { %v1649_v9 = vmul.f32 -1.442695, %v1430_v14  ;;  %v1650_v12 = vmul.f32 -1.442695, %v1432_v27 }
 0x827   :  { %1888 = vpow2.f32 %v1648_v22 }
 0x828   :  { %1890 = vpow2.f32 %v1649_v9 }
 0x829   :  { %1892 = vpow2.f32 %v1650_v12 }
 0x82a   :  { %1894 = vtanh.f32 %v1431_v8 }
 0x831   :  { %v1889_v37 = vpop.eup %1888 }
 0x832   :  { %v1891_v43 = vpop.eup %1890  ;;  %v1436_v49 = vadd.f32 1.0, %v1889_v37 }
 0x833   :  { %v1442_v30 = vadd.f32 1.0, %v1891_v43  ;;  %v1893_v21 = vpop.eup %1892 }
 0x834   :  { %1896 = vrcp.f32 %v1436_v49  ;;  %v1895_v2 = vpop.eup %1894  ;;  %v1449_v62 = vadd.f32 1.0, %v1893_v21 }
 0x835   :  { %1898 = vrcp.f32 %v1442_v30 }
 0x836   :  { %1900 = vrcp.f32 %v1449_v62 }
 0x83e   :  { %v1897_v38 = vpop.eup %1896 }
 0x83f   :  { %v1899_v0 = vpop.eup %1898  ;;  %v1453_v4 = vmul.f32 %v1897_v38, %v1895_v2 }
 0x840   :  { %v1452_v3 = vmul.f32 %v1899_v0, %v2740_v58  ;;  %v1901_v18 = vpop.eup %1900 }
 0x842   :  { %v1454_v61 = vadd.f32 %v1453_v4, %v1452_v3 }
 0x844   :  { %1902 = vtanh.f32 %v1454_v61 }
 0x84e   :  { %v1903_v31 = vpop.eup %1902 }
 0x84f   :  { %v1456_v32 = vmul.f32 %v1903_v31, %v1901_v18 }
 0x851   :  { %1457 = vst [vmem:[%s2786_s6] sm:$0xff] %v1456_v32  ;;  %v1458_v6 = vpack.c.bf16 %v1456_v32, %v1456_v32 }
 0x853   :  { %1686 = vmatmul.mubr.bf16.vlgmr.msra.gmra.mrb[48].mxu0 %v1458_v6 }
 0x926   :  { %v1564_v23 = vpop.f32.mrb[48].mxu0 }
 0x927   :  { %v1565_v24 = vadd.f32 %v1651_v19, %v1564_v23  ;;  %v1687_v25 = vpop.f32.mrb[49].mxu0 }
 0x928   :  { %v1567_v50 = vpop.f32.mrb[50].mxu0 }
 0x929   :  { %1570 = vst [vmem:[%s2788_s7] sm:$0xff] %v1565_v24  ;;  %v1688_v51 = vpop.f32.mrb[51].mxu0 }

</bundles_post_ra>
